<compile_context>
chip_gen: v7x
topology: tpu7x:2x2x1
jax: 0.10.0
libtpu: 0.0.40
codegen_flags: <defaults>
</compile_context>

<pallas_src>
import functools

import jax
import jax.numpy as jnp
from jax.experimental import pallas as pl
from jax.experimental.pallas import tpu as pltpu

LANE = 128


# ----------------------------- fused Pallas kernel ------------------------------

def _fused_head_kernel(num_patches,
                       patches_ref, txt_ref,
                       w_patch_ref, b_patch_ref,
                       w_bridge_ref, b_bridge_ref,
                       wc_ref, bc_ref,
                       logits_ref, acc_ref):
    """Fused: patch pool + patch-embed matmul + BridgeLayer + classifier.

    Grid: (batch_tile b [parallel], patch_tile p [arbitrary / reduction]).
    acc_ref (tile_b, K) f32 accumulates the sum of RAW patch rows for the current
    batch tile; all matmuls run once in the epilogue on the last patch tile.
    """
    p_idx = pl.program_id(1)

    @pl.when(p_idx == 0)
    def _():
        acc_ref[...] = jnp.zeros_like(acc_ref)

    # Hot loop: f32 sum of raw bf16 patch rows (VPU only, no MXU, no reshape).
    acc_ref[...] += jnp.sum(patches_ref[...].astype(jnp.float32), axis=1)

    @pl.when(p_idx == pl.num_programs(1) - 1)
    def _():
        # Mean pool of raw patches; linearity => single patch-embed matmul.
        img_mean = acc_ref[...] * jnp.float32(1.0 / num_patches)             # (tb, K) f32
        img = jnp.dot(img_mean.astype(jnp.bfloat16), w_patch_ref[...],
                      preferred_element_type=jnp.float32) + b_patch_ref[...]  # (tb, D_IMG)

        # BridgeLayer: Linear(D_IMG -> D_BRIDGE) + ReLU (epilogue in f32).
        h = jnp.dot(img.astype(jnp.bfloat16), w_bridge_ref[...],
                    preferred_element_type=jnp.float32) + b_bridge_ref[...]
        h = jnp.maximum(h, 0.0)

        # classifier(concat(h, txt)): one merged K = 2*D_TXT matmul,
        # lane-padded N (=128) so the store is an unmasked lane-dense vst.
        combined = jnp.concatenate([h.astype(jnp.bfloat16), txt_ref[...]], axis=-1)
        logits_ref[...] = (jnp.dot(combined, wc_ref[...],
                                   preferred_element_type=jnp.float32)
                           + bc_ref[...])                                     # (tb, N_PAD)


def fused_multimodal_head(patches, txt_feat, prep, *, tile_b, tile_p,
                          vmem_limit_bytes):
    """patches: (B, P, K) bf16, txt_feat: (B, D_TXT) f32/bf16. Returns (B, N_PAD) f32."""
    B, P, K = patches.shape
    d_img = prep["w_patch"].shape[1]
    d_bridge = prep["w_bridge"].shape[1]
    d_txt = txt_feat.shape[1]
    n_pad = prep["wc"].shape[1]
    assert B % tile_b == 0 and P % tile_p == 0

    kernel = functools.partial(_fused_head_kernel, P)
    grid = (B // tile_b, P // tile_p)

    # Advisory cost estimate so XLA overlaps neighbouring ops with the custom call.
    flops = 2 * B * (K * d_img + d_img * d_bridge + (d_bridge + d_txt) * n_pad)
    weight_bytes = sum(int(prep[k].size) * int(prep[k].dtype.itemsize)
                       for k in ("w_patch", "b_patch", "w_bridge", "b_bridge", "wc", "bc"))
    bytes_accessed = (B * P * K * 2) + (B * d_txt * 2) + weight_bytes + (B * n_pad * 4)

    return pl.pallas_call(
        kernel,
        out_shape=jax.ShapeDtypeStruct((B, n_pad), jnp.float32),
        grid_spec=pltpu.PrefetchScalarGridSpec(
            num_scalar_prefetch=0,
            grid=grid,
            in_specs=[
                pl.BlockSpec((tile_b, tile_p, K), lambda b, p: (b, p, 0)),    # patches stream
                pl.BlockSpec((tile_b, d_txt), lambda b, p: (b, 0)),           # text CLS
                pl.BlockSpec(prep["w_patch"].shape, lambda b, p: (0, 0)),     # resident weights
                pl.BlockSpec(prep["b_patch"].shape, lambda b, p: (0, 0)),
                pl.BlockSpec(prep["w_bridge"].shape, lambda b, p: (0, 0)),
                pl.BlockSpec(prep["b_bridge"].shape, lambda b, p: (0, 0)),
                pl.BlockSpec(prep["wc"].shape, lambda b, p: (0, 0)),
                pl.BlockSpec(prep["bc"].shape, lambda b, p: (0, 0)),
            ],
            out_specs=pl.BlockSpec((tile_b, n_pad), lambda b, p: (b, 0)),
            scratch_shapes=[pltpu.VMEM((tile_b, K), jnp.float32)],
        ),
        compiler_params=pltpu.CompilerParams(
            dimension_semantics=("parallel", "arbitrary"),
            vmem_limit_bytes=vmem_limit_bytes,
        ),
        cost_estimate=pl.CostEstimate(flops=flops, transcendentals=0,
                                      bytes_accessed=bytes_accessed),
    )(patches, txt_feat.astype(jnp.bfloat16),
      prep["w_patch"], prep["b_patch"],
      prep["w_bridge"], prep["b_bridge"],
      prep["wc"], prep["bc"])


# ---------------------- per-generation tile / VMEM selection --------------------

def select_tiles_and_vmem(B, P, K):
    """Pick (tile_b, tile_p, vmem_limit_bytes) per TPU generation.

    v7x (2 TensorCores, 64 MiB VMEM): batch axis split >= 2 ways so the 'parallel'
    grid axis shards across both cores; 32 MiB scoped VMEM; smaller patch buffer.
    v5e/v6e (1 TC, 128 MiB VMEM): full-batch tile (bigger epilogue M), 64 MiB
    scoped VMEM, larger patch buffer budget.
    """
    kind = ""
    try:
        kind = jax.devices()[0].device_kind.lower()
    except Exception:  # pragma: no cover - defensive only
        pass
    two_tc = "v7" in kind

    tile_b = B
    if two_tc and B % 2 == 0 and (B // 2) % 8 == 0:
        tile_b = B // 2                      # >= 2 parallel batch tiles for 2 TCs

    patch_buf_budget = (4 if two_tc else 8) * 1024 * 1024   # bytes per pipeline buffer
    tile_p = P if P % 8 != 0 else 8
    for cand in (256, 128, 64, 32, 16, 8):   # prefer multiples of 16 (bf16 packing)
        if P % cand == 0 and tile_b * cand * K * 2 <= patch_buf_budget:
            tile_p = cand
            break

    vmem_limit = (32 if two_tc else 64) * 1024 * 1024
    return tile_b, tile_p, vmem_limit


# ------------------------- stand-in backbone glue --------------------------

def extract_patches(pixel_values, patch_size):
    """NCHW -> (B, P, C*ps*ps) patch rows (dtype-preserving: feed bf16 pixels).

    TODO(synk): at real (e.g. 384x384) image sizes this transpose should be replaced
    by a BlockSpec/DMA gather (or NHWC host layout) to avoid an extra HBM pass.
    """
    B, C, H, W = pixel_values.shape
    ph, pw = H // patch_size, W // patch_size
    x = pixel_values.reshape(B, C, ph, patch_size, pw, patch_size)
    x = jnp.transpose(x, (0, 2, 4, 1, 3, 5))  # B, ph, pw, C, ps, ps
    return x.reshape(B, ph * pw, C * patch_size * patch_size)


def text_encoder(input_ids, attention_mask, embed_table):
    """Stand-in for PhoBERT: embedding lookup + masked mean pool -> CLS."""
    emb = embed_table[input_ids]                              # (B, S, D_TXT)
    mask = attention_mask.astype(jnp.float32)[..., None]      # (B, S, 1)
    summed = jnp.sum(emb * mask, axis=1)
    denom = jnp.maximum(jnp.sum(mask, axis=1), 1.0)
    return summed / denom                                     # (B, D_TXT)


# ------------------------- one-time parameter preparation -----------------------

def prepare_params(params, num_labels, lane=LANE):
    """Pad the classifier to a lane-dense 128-wide output, keep it as ONE merged
    (2*D_TXT, 128) weight (epilogue concatenates h and txt along lanes), and cast
    MXU operands to bf16.  Done ONCE outside the jitted forward."""
    wc, bc = params["w_cls"], params["b_cls"]
    n_pad = ((num_labels + lane - 1) // lane) * lane
    pad = n_pad - num_labels
    return {
        "w_patch": params["w_patch"].astype(jnp.bfloat16),
        "b_patch": params["b_patch"].astype(jnp.float32),
        "w_bridge": params["w_bridge"].astype(jnp.bfloat16),
        "b_bridge": params["b_bridge"].astype(jnp.float32),
        "wc": jnp.pad(wc, ((0, 0), (0, pad))).astype(jnp.bfloat16),
        "bc": jnp.pad(bc, ((0, 0), (0, pad))).astype(jnp.float32),
        "embed_table": params["embed_table"].astype(jnp.float32),
    }


# ------------------------------ full forward --------------------------------

def multimodal_forward(prep, pixel_values, input_ids, attention_mask,
                       labels=None, *, patch_size, num_labels,
                       tile_b, tile_p, vmem_limit_bytes):
    # Cast pixels to bf16 BEFORE patch extraction so the transpose writes bf16
    # (one fewer f32 HBM pass, and no second astype copy at the kernel boundary).
    patches = extract_patches(pixel_values.astype(jnp.bfloat16), patch_size)   # (B,P,K) bf16
    txt_feat = text_encoder(input_ids, attention_mask, prep["embed_table"])    # (B,D_TXT) f32
    logits_pad = fused_multimodal_head(patches, txt_feat, prep,
                                       tile_b=tile_b, tile_p=tile_p,
                                       vmem_limit_bytes=vmem_limit_bytes)
    logits = logits_pad[:, :num_labels]          # drop lane padding outside the kernel
    if labels is not None:
        logp = jax.nn.log_softmax(logits, axis=-1)
        loss = -jnp.mean(jnp.take_along_axis(logp, labels[:, None], axis=1))
        return loss, logits
    return logits


# --------------------------- pure-JAX f32 reference ------------------------------

def reference_forward(params, pixel_values, input_ids, attention_mask,
                      *, patch_size):
    patches = extract_patches(pixel_values.astype(jnp.float32), patch_size)
    img = jnp.mean(patches, axis=1) @ params["w_patch"] + params["b_patch"]
    h = jnp.maximum(img @ params["w_bridge"] + params["b_bridge"], 0.0)
    txt = text_encoder(input_ids, attention_mask, params["embed_table"])
    combined = jnp.concatenate([h, txt], axis=1)
    return combined @ params["w_cls"] + params["b_cls"]


# --------------------------------- main -------------------------------------

if __name__ == "__main__":
    # Small shapes consistent with the module's forward (scaled-down ViT/PhoBERT).
    B = 16             # batch (allows >=2 parallel batch tiles of 8 on v7x)
    C, H, W = 3, 64, 64
    PATCH = 16         # -> P = 16 patches/image, K = C*16*16 = 768
    D_IMG = 256        # "ViT hidden size" (scaled down from 768)
    D_TXT = 128        # "PhoBERT hidden size" (scaled down from 768)
    SEQ = 8
    VOCAB = 64
    NUM_LABELS = 4

    key = jax.random.PRNGKey(0)
    keys = jax.random.split(key, 10)
    scale = 0.05

    params = {
        "w_patch": scale * jax.random.normal(keys[0], (C * PATCH * PATCH, D_IMG), jnp.float32),
        "b_patch": jnp.zeros((1, D_IMG), jnp.float32),
        "embed_table": scale * jax.random.normal(keys[1], (VOCAB, D_TXT), jnp.float32),
        # BridgeLayer: Linear(D_IMG -> D_TXT) + ReLU
        "w_bridge": scale * jax.random.normal(keys[2], (D_IMG, D_TXT), jnp.float32),
        "b_bridge": scale * jax.random.normal(keys[3], (1, D_TXT), jnp.float32),
        # classifier: Linear(bridge_out + D_TXT -> NUM_LABELS)
        "w_cls": scale * jax.random.normal(keys[4], (2 * D_TXT, NUM_LABELS), jnp.float32),
        "b_cls": scale * jax.random.normal(keys[5], (1, NUM_LABELS), jnp.float32),
    }

    # Hoisted, one-time prep: merged + lane-padded classifier, bf16 casts.
    prep = prepare_params(params, NUM_LABELS)

    pixel_values = jax.random.normal(keys[6], (B, C, H, W), jnp.float32)
    input_ids = jax.random.randint(keys[7], (B, SEQ), 0, VOCAB, jnp.int32)
    attention_mask = jnp.ones((B, SEQ), jnp.int32)
    labels = jax.random.randint(keys[8], (B,), 0, NUM_LABELS, jnp.int32)

    # Per-generation tile / VMEM selection (static; done once outside jit).
    K = C * PATCH * PATCH
    P = (H // PATCH) * (W // PATCH)
    tile_b, tile_p, vmem_limit = select_tiles_and_vmem(B, P, K)

    fwd = jax.jit(functools.partial(multimodal_forward,
                                    patch_size=PATCH, num_labels=NUM_LABELS,
                                    tile_b=tile_b, tile_p=tile_p,
                                    vmem_limit_bytes=vmem_limit))
    logits = fwd(prep, pixel_values, input_ids, attention_mask)
    jax.block_until_ready(logits)
    assert logits.shape == (B, NUM_LABELS)
    assert bool(jnp.all(jnp.isfinite(logits)))

    # Correctness vs. pure-JAX f32 reference (bf16 MXU inputs -> small drift).
    ref = reference_forward(params, pixel_values, input_ids, attention_mask,
                            patch_size=PATCH)
    max_err = float(jnp.max(jnp.abs(logits - ref)))
    assert max_err < 1.5e-2, f"kernel vs reference mismatch: max abs err {max_err}"

    # Also exercise the (loss, logits) branch.
    loss, logits2 = multimodal_forward(prep, pixel_values, input_ids, attention_mask,
                                       labels=labels, patch_size=PATCH,
                                       num_labels=NUM_LABELS, tile_b=tile_b,
                                       tile_p=tile_p, vmem_limit_bytes=vmem_limit)
    jax.block_until_ready((loss, logits2))
    assert bool(jnp.isfinite(loss))

    print("KERNEL_OK")
</pallas_src>

<mosaic_0001>
module attributes {stable_mosaic.version = 11 : i64} {
  func.func @_fused_head_kernel(%arg0: i32, %arg1: i32, %arg2: memref<16x16x768xbf16, #tpu.memory_space<vmem>>, %arg3: memref<16x128xbf16, #tpu.memory_space<vmem>>, %arg4: memref<768x256xbf16, #tpu.memory_space<vmem>>, %arg5: memref<1x256xf32, #tpu.memory_space<vmem>>, %arg6: memref<256x128xbf16, #tpu.memory_space<vmem>>, %arg7: memref<1x128xf32, #tpu.memory_space<vmem>>, %arg8: memref<256x128xbf16, #tpu.memory_space<vmem>>, %arg9: memref<1x128xf32, #tpu.memory_space<vmem>>, %arg10: memref<16x128xf32, #tpu.memory_space<vmem>>, %arg11: memref<16x768xf32, #tpu.memory_space<vmem>>) attributes {dimension_semantics = [#tpu.dimension_semantics<parallel>, #tpu.dimension_semantics<arbitrary>], iteration_bounds = array<i64: 1, 1>, scalar_prefetch = 0 : i64, scratch_operands = 1 : i64, tpu.core_type = #tpu.core_type<tc>, window_params = [{transform_indices = @transform_0, window_bounds = array<i64: 16, 16, 768>}, {transform_indices = @transform_1, window_bounds = array<i64: 16, 128>}, {pipeline_mode = #tpu.pipeline_mode<synchronous>, transform_indices = @transform_2, window_bounds = array<i64: 768, 256>}, {pipeline_mode = #tpu.pipeline_mode<synchronous>, transform_indices = @transform_3, window_bounds = array<i64: 1, 256>}, {pipeline_mode = #tpu.pipeline_mode<synchronous>, transform_indices = @transform_4, window_bounds = array<i64: 256, 128>}, {pipeline_mode = #tpu.pipeline_mode<synchronous>, transform_indices = @transform_5, window_bounds = array<i64: 1, 128>}, {pipeline_mode = #tpu.pipeline_mode<synchronous>, transform_indices = @transform_6, window_bounds = array<i64: 256, 128>}, {pipeline_mode = #tpu.pipeline_mode<synchronous>, transform_indices = @transform_7, window_bounds = array<i64: 1, 128>}, {transform_indices = @transform_8, window_bounds = array<i64: 16, 128>}]} {
    %c0_i32 = arith.constant 0 : i32
    %0 = arith.cmpi eq, %arg1, %c0_i32 : i32
    %1 = arith.extui %0 : i1 to i32
    %c0_i32_0 = arith.constant 0 : i32
    %2 = arith.cmpi ne, %1, %c0_i32_0 : i32
    scf.if %2 {
      %cst_9 = arith.constant 0.000000e+00 : f32
      %12 = vector.broadcast %cst_9 : f32 to vector<16x768xf32>
      %c0_10 = arith.constant 0 : index
      %c0_11 = arith.constant 0 : index
      %13 = vector.load %arg11[%c0_10, %c0_11] : memref<16x768xf32, #tpu.memory_space<vmem>>, vector<16x768xf32>
      tpu.vector_store %arg11[%c0_10, %c0_11], %12 {strides = array<i32>} : memref<16x768xf32, #tpu.memory_space<vmem>>, vector<16x768xf32>,
    } else {
    }
    %c0 = arith.constant 0 : index
    %c0_1 = arith.constant 0 : index
    %3 = vector.load %arg11[%c0, %c0_1] : memref<16x768xf32, #tpu.memory_space<vmem>>, vector<16x768xf32>
    %c0_2 = arith.constant 0 : index
    %c0_3 = arith.constant 0 : index
    %c0_4 = arith.constant 0 : index
    %4 = vector.load %arg2[%c0_2, %c0_3, %c0_4] : memref<16x16x768xbf16, #tpu.memory_space<vmem>>, vector<16x16x768xbf16>
    %5 = arith.extf %4 : vector<16x16x768xbf16> to vector<16x16x768xf32>
    %cst = arith.constant dense<0.000000e+00> : vector<16x768xf32>
    %6 = vector.multi_reduction <add>, %5, %cst [1] : vector<16x16x768xf32> to vector<16x768xf32>
    %7 = arith.addf %3, %6 : vector<16x768xf32>
    %c0_5 = arith.constant 0 : index
    %c0_6 = arith.constant 0 : index
    %8 = vector.load %arg11[%c0_5, %c0_6] : memref<16x768xf32, #tpu.memory_space<vmem>>, vector<16x768xf32>
    tpu.vector_store %arg11[%c0_5, %c0_6], %7 {strides = array<i32>} : memref<16x768xf32, #tpu.memory_space<vmem>>, vector<16x768xf32>,
    %c0_i32_7 = arith.constant 0 : i32
    %9 = arith.cmpi eq, %arg1, %c0_i32_7 : i32
    %10 = arith.extui %9 : i1 to i32
    %c0_i32_8 = arith.constant 0 : i32
    %11 = arith.cmpi ne, %10, %c0_i32_8 : i32
    scf.if %11 {
      %c0_9 = arith.constant 0 : index
      %c0_10 = arith.constant 0 : index
      %12 = vector.load %arg11[%c0_9, %c0_10] : memref<16x768xf32, #tpu.memory_space<vmem>>, vector<16x768xf32>
      %cst_11 = arith.constant 6.250000e-02 : f32
      %13 = vector.broadcast %cst_11 : f32 to vector<16x768xf32>
      %14 = arith.mulf %12, %13 : vector<16x768xf32>
      %15 = arith.truncf %14 : vector<16x768xf32> to vector<16x768xbf16>
      %c0_12 = arith.constant 0 : index
      %c0_13 = arith.constant 0 : index
      %16 = vector.load %arg4[%c0_12, %c0_13] : memref<768x256xbf16, #tpu.memory_space<vmem>>, vector<768x256xbf16>
      %cst_14 = arith.constant dense<0.000000e+00> : vector<16x256xf32>
      %17 = tpu.matmul %15, %16, %cst_14 {dimension_numbers = #tpu.dot_dimension_numbers<[1], [0], [0], [1], [0, 0, 1, 1], [], []>} : vector<16x768xbf16>, vector<768x256xbf16>, vector<16x256xf32> -> vector<16x256xf32>
      %c0_15 = arith.constant 0 : index
      %c0_16 = arith.constant 0 : index
      %18 = vector.load %arg5[%c0_15, %c0_16] : memref<1x256xf32, #tpu.memory_space<vmem>>, vector<1x256xf32>
      %19 = vector.broadcast %18 : vector<1x256xf32> to vector<16x256xf32>
      %20 = arith.addf %17, %19 : vector<16x256xf32>
      %21 = arith.truncf %20 : vector<16x256xf32> to vector<16x256xbf16>
      %c0_17 = arith.constant 0 : index
      %c0_18 = arith.constant 0 : index
      %22 = vector.load %arg6[%c0_17, %c0_18] : memref<256x128xbf16, #tpu.memory_space<vmem>>, vector<256x128xbf16>
      %cst_19 = arith.constant dense<0.000000e+00> : vector<16x128xf32>
      %23 = tpu.matmul %21, %22, %cst_19 {dimension_numbers = #tpu.dot_dimension_numbers<[1], [0], [0], [1], [0, 0, 1, 1], [], []>} : vector<16x256xbf16>, vector<256x128xbf16>, vector<16x128xf32> -> vector<16x128xf32>
      %c0_20 = arith.constant 0 : index
      %c0_21 = arith.constant 0 : index
      %24 = vector.load %arg7[%c0_20, %c0_21] : memref<1x128xf32, #tpu.memory_space<vmem>>, vector<1x128xf32>
      %25 = vector.broadcast %24 : vector<1x128xf32> to vector<16x128xf32>
      %26 = arith.addf %23, %25 : vector<16x128xf32>
      %cst_22 = arith.constant 0.000000e+00 : f32
      %27 = vector.broadcast %cst_22 : f32 to vector<16x128xf32>
      %28 = arith.maximumf %26, %27 : vector<16x128xf32>
      %29 = arith.truncf %28 : vector<16x128xf32> to vector<16x128xbf16>
      %c0_23 = arith.constant 0 : index
      %c0_24 = arith.constant 0 : index
      %30 = vector.load %arg3[%c0_23, %c0_24] : memref<16x128xbf16, #tpu.memory_space<vmem>>, vector<16x128xbf16>
      %31 = tpu.concatenate %29, %30 in 1 : vector<16x128xbf16>, vector<16x128xbf16> -> vector<16x256xbf16>
      %c0_25 = arith.constant 0 : index
      %c0_26 = arith.constant 0 : index
      %32 = vector.load %arg8[%c0_25, %c0_26] : memref<256x128xbf16, #tpu.memory_space<vmem>>, vector<256x128xbf16>
      %cst_27 = arith.constant dense<0.000000e+00> : vector<16x128xf32>
      %33 = tpu.matmul %31, %32, %cst_27 {dimension_numbers = #tpu.dot_dimension_numbers<[1], [0], [0], [1], [0, 0, 1, 1], [], []>} : vector<16x256xbf16>, vector<256x128xbf16>, vector<16x128xf32> -> vector<16x128xf32>
      %c0_28 = arith.constant 0 : index
      %c0_29 = arith.constant 0 : index
      %34 = vector.load %arg9[%c0_28, %c0_29] : memref<1x128xf32, #tpu.memory_space<vmem>>, vector<1x128xf32>
      %35 = vector.broadcast %34 : vector<1x128xf32> to vector<16x128xf32>
      %36 = arith.addf %33, %35 : vector<16x128xf32>
      %c0_30 = arith.constant 0 : index
      %c0_31 = arith.constant 0 : index
      %37 = vector.load %arg10[%c0_30, %c0_31] : memref<16x128xf32, #tpu.memory_space<vmem>>, vector<16x128xf32>
      tpu.vector_store %arg10[%c0_30, %c0_31], %36 {strides = array<i32>} : memref<16x128xf32, #tpu.memory_space<vmem>>, vector<16x128xf32>,
    } else {
    }
    return
  }
  func.func @transform_0(%arg0: i32, %arg1: i32) -> (i32, i32, i32) {
    %c0_i32 = arith.constant 0 : i32
    %c0_i32_0 = arith.constant 0 : i32
    return %arg0, %arg1, %c0_i32 : i32, i32, i32
  }
  func.func @transform_1(%arg0: i32, %arg1: i32) -> (i32, i32) {
    %c0_i32 = arith.constant 0 : i32
    %c0_i32_0 = arith.constant 0 : i32
    return %arg0, %c0_i32 : i32, i32
  }
  func.func @transform_2(%arg0: i32, %arg1: i32) -> (i32, i32) {
    %c0_i32 = arith.constant 0 : i32
    %c0_i32_0 = arith.constant 0 : i32
    %c0_i32_1 = arith.constant 0 : i32
    return %c0_i32, %c0_i32_0 : i32, i32
  }
  func.func @transform_3(%arg0: i32, %arg1: i32) -> (i32, i32) {
    %c0_i32 = arith.constant 0 : i32
    %c0_i32_0 = arith.constant 0 : i32
    %c0_i32_1 = arith.constant 0 : i32
    return %c0_i32, %c0_i32_0 : i32, i32
  }
  func.func @transform_4(%arg0: i32, %arg1: i32) -> (i32, i32) {
    %c0_i32 = arith.constant 0 : i32
    %c0_i32_0 = arith.constant 0 : i32
    %c0_i32_1 = arith.constant 0 : i32
    return %c0_i32, %c0_i32_0 : i32, i32
  }
  func.func @transform_5(%arg0: i32, %arg1: i32) -> (i32, i32) {
    %c0_i32 = arith.constant 0 : i32
    %c0_i32_0 = arith.constant 0 : i32
    %c0_i32_1 = arith.constant 0 : i32
    return %c0_i32, %c0_i32_0 : i32, i32
  }
  func.func @transform_6(%arg0: i32, %arg1: i32) -> (i32, i32) {
    %c0_i32 = arith.constant 0 : i32
    %c0_i32_0 = arith.constant 0 : i32
    %c0_i32_1 = arith.constant 0 : i32
    return %c0_i32, %c0_i32_0 : i32, i32
  }
  func.func @transform_7(%arg0: i32, %arg1: i32) -> (i32, i32) {
    %c0_i32 = arith.constant 0 : i32
    %c0_i32_0 = arith.constant 0 : i32
    %c0_i32_1 = arith.constant 0 : i32
    return %c0_i32, %c0_i32_0 : i32, i32
  }
  func.func @transform_8(%arg0: i32, %arg1: i32) -> (i32, i32) {
    %c0_i32 = arith.constant 0 : i32
    %c0_i32_0 = arith.constant 0 : i32
    return %arg0, %c0_i32 : i32, i32
  }
}

</mosaic_0001>

<bundles_post_ra>
// kernel: multimodal_forward.1
= control target key start
LH: loop header
LB: loop body
LE: loop exit
PB: predicated region body
PF: predicated region fallthrough
CT: control target
= control target key end

     0   :  { %13 = vsyncpa [#allocation4], 0  ;;  %s4184_s0 = inlined_call_operand.hbm [shape: bf16[16,16,768], index: 0, kind: input, shape index: {}]   ;;  %s4185_s1 = inlined_call_operand.hbm [shape: bf16[16,128], index: 1, kind: input, shape index: {}]   ;;  %s4186_s2 = inlined_call_operand.hbm [shape: bf16[768,256], index: 2, kind: input, shape index: {}]   ;;  %s4187_s3 = inlined_call_operand.hbm [shape: f32[1,256], index: 3, kind: input, shape index: {}]   ;;  %s4188_s4 = inlined_call_operand.hbm [shape: bf16[256,128], index: 4, kind: input, shape index: {}]   ;;  %s4189_s5 = inlined_call_operand.hbm [shape: f32[1,128], index: 5, kind: input, shape index: {}]   ;;  %s4190_s6 = inlined_call_operand.hbm [shape: bf16[256,128], index: 6, kind: input, shape index: {}]   ;;  %s4191_s7 = inlined_call_operand.hbm [shape: f32[1,128], index: 7, kind: input, shape index: {}]   ;;  %s4192_s8 = inlined_call_operand.hbm [shape: f32[16,128], index: 8, kind: output, shape index: {}]  }
   0x1   :  { %14 = vsyncpa [#allocation7], 0 }
   0x2   :  { %15 = vsyncpa [#allocation10], 0 }
   0x3   :  { %16 = vsyncpa [#allocation13], 0 }
   0x4   :  { %17 = vsyncpa [#allocation16], 0 }
   0x5   :  { %18 = vsyncpa [#allocation5], 0  ;;  %s3072_s27 = smov [#allocation6]   ;;  %s2862_s9 = scalar_lea.hbm %s4185_s1, 128 }
   0x6   :  { %s36_s28 = sshll.u32 %s3072_s27, 4  ;;  %p2863_p0 = scmp.ne.s32.totalorder %s4185_s1, %s2862_s9  ;;  %s37_s28 = int_to_ptr.vmem [resolvable:$true] %s36_s28 }
   0x7   :  { %p2866_p1 = scmp.lt.u32.totalorder %s2862_s9, %s4185_s1 }
   0x9   :  { %p2868_p2 = pnand %p2866_p1, %p2863_p0 }
   0xb   :  { %2871 = shalt.err (!%p2868_p2)
}
   0xc   :  { %s2872_s14 = scalar_lea.vmem %s37_s28, 128  ;;  %p2877_p4 = scmp.lt.s32.totalorder %s37_s28, %s37_s28 }
   0xd   :  { %p2873_p3 = scmp.ne.s32.totalorder %s37_s28, %s2872_s14  ;;  %p2878_p5 = scmp.lt.s32.totalorder %s2872_s14, %s2872_s14 }
   0xf   :  { %p2879_p6 = por %p2878_p5, %p2877_p4 }
  0x11   :  { %p2880_p7 = pnand %p2879_p6, %p2873_p3 }
  0x13   :  { %2883 = shalt.err (!%p2880_p7)
}
  0x14   :  { %s3073_s15 = smov 64   ;;  %s3074_s16 = smov 4  }
  0x15   :  { %42 = dma.hbm_to_vmem [thread:$0]  %s4185_s1, 128, %s37_s28, [#allocation7], %s3073_s15, %s3073_s15, %s3074_s16  }
  0x16   :  { %s3075_s19 = smov [#allocation9]   ;;  %s3076_s21 = smov [#allocation12]  }
  0x17   :  { %s61_s20 = sshll.u32 %s3075_s19, 4  ;;  %s83_s22 = sshll.u32 %s3076_s21, 4  ;;  %s62_s20 = int_to_ptr.vmem [resolvable:$true] %s61_s20  ;;  %s84_s22 = int_to_ptr.vmem [resolvable:$true] %s83_s22 }
  0x18   :  { %s2884_s25 = scalar_lea.hbm %s4187_s3, 32 }
  0x19   :  { %p2885_p8 = scmp.ne.s32.totalorder %s4187_s3, %s2884_s25  ;;  %p2888_p9 = scmp.lt.u32.totalorder %s2884_s25, %s4187_s3 }
  0x1b   :  { %p2890_p10 = pnand %p2888_p9, %p2885_p8 }
  0x1d   :  { %2893 = shalt.err (!%p2890_p10)
}
  0x1e   :  { %s2894_s1 = scalar_lea.vmem %s62_s20, 32  ;;  %p2899_p12 = scmp.lt.s32.totalorder %s62_s20, %s62_s20 }
  0x1f   :  { %p2895_p11 = scmp.ne.s32.totalorder %s62_s20, %s2894_s1  ;;  %p2900_p13 = scmp.lt.s32.totalorder %s2894_s1, %s2894_s1 }
  0x21   :  { %p2901_p0 = por %p2900_p13, %p2899_p12 }
  0x23   :  { %p2902_p1 = pnand %p2901_p0, %p2895_p11 }
  0x25   :  { %2905 = shalt.err (!%p2902_p1)
}
  0x26   :  { %64 = dma.hbm_to_vmem [thread:$0]  %s4187_s3, 32, %s62_s20, [#allocation10]  }
  0x27   :  { %s2906_s12 = scalar_lea.hbm %s4189_s5, 16 }
  0x28   :  { %p2907_p2 = scmp.ne.s32.totalorder %s4189_s5, %s2906_s12  ;;  %p2910_p3 = scmp.lt.u32.totalorder %s2906_s12, %s4189_s5 }
  0x2a   :  { %p2912_p4 = pnand %p2910_p3, %p2907_p2 }
  0x2c   :  { %2915 = shalt.err (!%p2912_p4)
}
  0x2d   :  { %s2916_s19 = scalar_lea.vmem %s84_s22, 16  ;;  %s2920_s21 = scalar_lea.vmem %s84_s22, 32 }
  0x2e   :  { %p2917_p5 = scmp.ne.s32.totalorder %s84_s22, %s2916_s19  ;;  %p2921_p6 = scmp.lt.s32.totalorder %s84_s22, %s84_s22 }
  0x2f   :  { %p2922_p7 = scmp.lt.s32.totalorder %s2920_s21, %s2916_s19 }
  0x31   :  { %p2923_p8 = por %p2922_p7, %p2921_p6 }
  0x33   :  { %p2924_p9 = pnand %p2923_p8, %p2917_p5 }
  0x35   :  { %2927 = shalt.err (!%p2924_p9)
}
  0x36   :  { %86 = dma.hbm_to_vmem [thread:$0]  %s4189_s5, 16, %s84_s22, [#allocation13]  }
  0x37   :  { %s3077_s23 = smov [#allocation3]   ;;  %s2928_s27 = scalar_lea.hbm %s4184_s0, 12288 }
  0x38   :  { %s24_s24 = sshll.u32 %s3077_s23, 4  ;;  %p2929_p10 = scmp.ne.s32.totalorder %s4184_s0, %s2928_s27  ;;  %s25_s24 = int_to_ptr.vmem [resolvable:$true] %s24_s24 }
  0x39   :  { %p2932_p11 = scmp.lt.u32.totalorder %s2928_s27, %s4184_s0 }
  0x3b   :  { %p2934_p12 = pnand %p2932_p11, %p2929_p10 }
  0x3d   :  { %2937 = shalt.err (!%p2934_p12)
}
  0x3e   :  { %s2938_s9 = scalar_lea.vmem %s25_s24, 12288  ;;  %p2943_p0 = scmp.lt.s32.totalorder %s25_s24, %s25_s24 }
  0x3f   :  { %p2939_p13 = scmp.ne.s32.totalorder %s25_s24, %s2938_s9  ;;  %p2944_p1 = scmp.lt.s32.totalorder %s2938_s9, %s2938_s9 }
  0x41   :  { %p2945_p2 = por %p2944_p1, %p2943_p0 }
  0x43   :  { %p2946_p3 = pnand %p2945_p2, %p2939_p13 }
  0x45   :  { %2949 = shalt.err (!%p2946_p3)
}
  0x46   :  { %s3078_s5 = smov 384   ;;  %s3079_s22 = smov 24  }
  0x47   :  { %30 = dma.hbm_to_vmem [thread:$0]  %s4184_s0, 12288, %s25_s24, [#allocation4], %s3078_s5, %s3078_s5, %s3079_s22  }
  0x48   :  { %s3080_s12 = smov [#allocation8]   ;;  %s2950_s18 = scalar_lea.hbm %s4186_s2, 12288 }
  0x49   :  { %s48_s13 = sshll.u32 %s3080_s12, 4  ;;  %p2951_p4 = scmp.ne.s32.totalorder %s4186_s2, %s2950_s18  ;;  %s49_s13 = int_to_ptr.vmem [resolvable:$true] %s48_s13 }
  0x4a   :  { %p2954_p5 = scmp.lt.u32.totalorder %s2950_s18, %s4186_s2 }
  0x4c   :  { %p2956_p6 = pnand %p2954_p5, %p2951_p4 }
  0x4e   :  { %2959 = shalt.err (!%p2956_p6)
}
  0x4f   :  { %s2960_s23 = scalar_lea.vmem %s49_s13, 12288  ;;  %p2965_p8 = scmp.lt.s32.totalorder %s49_s13, %s49_s13 }
  0x50   :  { %p2961_p7 = scmp.ne.s32.totalorder %s49_s13, %s2960_s23  ;;  %p2966_p9 = scmp.lt.s32.totalorder %s2960_s23, %s2960_s23 }
  0x52   :  { %p2967_p10 = por %p2966_p9, %p2965_p8 }
  0x54   :  { %p2968_p11 = pnand %p2967_p10, %p2961_p7 }
  0x56   :  { %2971 = shalt.err (!%p2968_p11)
}
  0x57   :  { %s3081_s0 = smov 128   ;;  %s3082_s24 = smov 8  }
  0x58   :  { %54 = dma.hbm_to_vmem [thread:$0]  %s4186_s2, 12288, %s49_s13, [#allocation7], %s3081_s0, %s3081_s0, %s3082_s24  }
  0x59   :  { %s3083_s27 = smov [#allocation11]   ;;  %s3084_s30 = smov [#allocation14]  }
  0x5a   :  { %s70_s29 = sshll.u32 %s3083_s27, 4  ;;  %s92_s1 = sshll.u32 %s3084_s30, 4  ;;  %s71_s29 = int_to_ptr.vmem [resolvable:$true] %s70_s29  ;;  %s93_s1 = int_to_ptr.vmem [resolvable:$true] %s92_s1 }
  0x5b   :  { %s2972_s5 = scalar_lea.hbm %s4188_s4, 2048 }
  0x5c   :  { %p2973_p12 = scmp.ne.s32.totalorder %s4188_s4, %s2972_s5  ;;  %p2976_p13 = scmp.lt.u32.totalorder %s2972_s5, %s4188_s4 }
  0x5e   :  { %p2978_p0 = pnand %p2976_p13, %p2973_p12 }
  0x60   :  { %2981 = shalt.err (!%p2978_p0)
}
  0x61   :  { %s2982_s2 = scalar_lea.vmem %s71_s29, 2048  ;;  %p2987_p2 = scmp.lt.s32.totalorder %s71_s29, %s71_s29 }
  0x62   :  { %p2983_p1 = scmp.ne.s32.totalorder %s71_s29, %s2982_s2  ;;  %p2988_p3 = scmp.lt.s32.totalorder %s2982_s2, %s2982_s2 }
  0x64   :  { %p2989_p4 = por %p2988_p3, %p2987_p2 }
  0x66   :  { %p2990_p5 = pnand %p2989_p4, %p2983_p1 }
  0x68   :  { %2993 = shalt.err (!%p2990_p5)
}
  0x69   :  { %76 = dma.hbm_to_vmem [thread:$0]  %s4188_s4, 2048, %s71_s29, [#allocation10], %s3073_s15, %s3073_s15, %s3074_s16  }
  0x6a   :  { %s2994_s19 = scalar_lea.hbm %s4190_s6, 2048 }
  0x6b   :  { %p2995_p6 = scmp.ne.s32.totalorder %s4190_s6, %s2994_s19  ;;  %p2998_p7 = scmp.lt.u32.totalorder %s2994_s19, %s4190_s6 }
  0x6d   :  { %p3000_p8 = pnand %p2998_p7, %p2995_p6 }
  0x6f   :  { %3003 = shalt.err (!%p3000_p8)
}
  0x70   :  { %s3004_s25 = scalar_lea.vmem %s93_s1, 2048  ;;  %p3009_p10 = scmp.lt.s32.totalorder %s93_s1, %s93_s1 }
  0x71   :  { %p3005_p9 = scmp.ne.s32.totalorder %s93_s1, %s3004_s25  ;;  %p3010_p11 = scmp.lt.s32.totalorder %s3004_s25, %s3004_s25 }
  0x73   :  { %p3011_p12 = por %p3010_p11, %p3009_p10 }
  0x75   :  { %p3012_p13 = pnand %p3011_p12, %p3005_p9 }
  0x77   :  { %3015 = shalt.err (!%p3012_p13)
}
  0x78   :  { %98 = dma.hbm_to_vmem [thread:$0]  %s4190_s6, 2048, %s93_s1, [#allocation13], %s3073_s15, %s3073_s15, %s3074_s16  }
  0x79   :  { %s3085_s27 = smov [#allocation15]   ;;  %s3016_s9 = scalar_lea.hbm %s4191_s7, 16 }
  0x7a   :  { %s105_s29 = sshll.u32 %s3085_s27, 4  ;;  %p3017_p0 = scmp.ne.s32.totalorder %s4191_s7, %s3016_s9  ;;  %s106_s29 = int_to_ptr.vmem [resolvable:$true] %s105_s29 }
  0x7b   :  { %p3020_p1 = scmp.lt.u32.totalorder %s3016_s9, %s4191_s7 }
  0x7d   :  { %p3022_p2 = pnand %p3020_p1, %p3017_p0 }
  0x7f   :  { %3025 = shalt.err (!%p3022_p2)
}
  0x80   :  { %s3026_s12 = scalar_lea.vmem %s106_s29, 16  ;;  %s3030_s6 = scalar_lea.vmem %s106_s29, 32 }
  0x81   :  { %p3027_p3 = scmp.ne.s32.totalorder %s106_s29, %s3026_s12  ;;  %p3031_p4 = scmp.lt.s32.totalorder %s106_s29, %s106_s29 }
  0x82   :  { %p3032_p5 = scmp.lt.s32.totalorder %s3030_s6, %s3026_s12 }
  0x84   :  { %p3033_p6 = por %p3032_p5, %p3031_p4 }
  0x86   :  { %p3034_p7 = pnand %p3033_p6, %p3027_p3 }
  0x88   :  { %3037 = shalt.err (!%p3034_p7)
}
  0x89   :  { %108 = dma.hbm_to_vmem [thread:$0]  %s4191_s7, 16, %s106_s29, [#allocation16]  }
  0x8a   :  { %3060 = dma.done.wait [#allocation4], 12288  }
  0x8b   :  { %3061 = vsyncadd [#allocation4], 4294955008 }
  0x8c   :  { %3062 = dma.done.wait [#allocation7], 12416  }
  0x8d   :  { %3063 = vsyncadd [#allocation7], 4294954880 }
  0x8e   :  { %3064 = dma.done.wait [#allocation10], 2080  }
  0x8f   :  { %3065 = vsyncadd [#allocation10], 4294965216 }
  0x90   :  { %3066 = dma.done.wait [#allocation13], 2064  }
  0x91   :  { %3067 = vsyncadd [#allocation13], 4294965232 }
  0x92   :  { %3068 = dma.done.wait [#allocation16], 16  }
  0x93   :  { %3069 = vsyncadd [#allocation16], 4294967280  ;;  %v2685_v0 = vld [vmem:[#allocation8 + $0x104] ss:$8 sps:$4 sm:$0xff]   ;;  %v2687_v1 = vld [vmem:[#allocation8 + $0x100] ss:$8 sps:$4 sm:$0xff]  }
  0x94   :  { %2009 = vmatprep.subr.bf16.mxu0 %v2685_v0  ;;  %v2688_v2 = vld [vmem:[#allocation8 + $0x114] ss:$8 sps:$4 sm:$0xff]   ;;  %v2690_v3 = vld [vmem:[#allocation8 + $0x110] ss:$8 sps:$4 sm:$0xff]   ;;  %v2691_v4 = vld [vmem:[#allocation8 + $0x124] ss:$8 sps:$4 sm:$0xff]  }
  0x95   :  { %2010 = vmatpush1.bf16.msra.mxu0 %v2687_v1  ;;  %v2693_v5 = vld [vmem:[#allocation8 + $0x120] ss:$8 sps:$4 sm:$0xff]   ;;  %v2694_v6 = vld [vmem:[#allocation8 + $0x134] ss:$8 sps:$4 sm:$0xff]   ;;  %v2696_v7 = vld [vmem:[#allocation8 + $0x130] ss:$8 sps:$4 sm:$0xff]  }
  0x96   :  { %2011 = vmatprep.subr.bf16.mxu0 %v2688_v2  ;;  %v2697_v8 = vld [vmem:[#allocation8 + $0x144] ss:$8 sps:$4 sm:$0xff]   ;;  %v2699_v9 = vld [vmem:[#allocation8 + $0x140] ss:$8 sps:$4 sm:$0xff]   ;;  %v2700_v10 = vld [vmem:[#allocation8 + $0x154] ss:$8 sps:$4 sm:$0xff]  }
  0x97   :  { %v2702_v11 = vld [vmem:[#allocation8 + $0x150] ss:$8 sps:$4 sm:$0xff]   ;;  %v2703_v12 = vld [vmem:[#allocation8 + $0x164] ss:$8 sps:$4 sm:$0xff]   ;;  %v2732_v14 = vld [vmem:[#allocation8] ss:$8 sps:$4 sm:$0xff]  }
  0x98   :  { %v2730_v13 = vld [vmem:[#allocation8 + $0x4] ss:$8 sps:$4 sm:$0xff]   ;;  %v2705_v15 = vld [vmem:[#allocation8 + $0x160] ss:$8 sps:$4 sm:$0xff]   ;;  %v2706_v16 = vld [vmem:[#allocation8 + $0x174] ss:$8 sps:$4 sm:$0xff]  }
  0x99   :  { %2012 = vmatpush1.bf16.msra.mxu0 %v2690_v3  ;;  %1966 = vmatprep.subr.bf16.mxu1 %v2730_v13  ;;  %v2736_v17 = vld [vmem:[#allocation8 + $0x14] ss:$8 sps:$4 sm:$0xff]   ;;  %v2738_v18 = vld [vmem:[#allocation8 + $0x10] ss:$8 sps:$4 sm:$0xff]   ;;  %v3240_v19 = vld [vmem:[#allocation3 + $0x8] sm:$0xff]  ;;  %vm1218_vm0 = vcmask 1041409  }
  0x9a   :  { %2013 = vmatprep.subr.bf16.mxu0 %v2691_v4  ;;  %1967 = vmatpush1.bf16.msra.mxu1 %v2732_v14  ;;  %v3242_v20 = vld [vmem:[#allocation3 + $0x20] sm:$0xff]  ;;  %v3244_v21 = vld [vmem:[#allocation3 + $0x38] sm:$0xff]  ;;  %v3246_v23 = vld [vmem:[#allocation3 + $0x50] sm:$0xff]  ;;  %v261_v27 = vunpack.c.h.bf16 %v3240_v19  ;;  %vm1220_vm1 = vcmask 1042434   ;;  %vm1222_vm2 = vcmask 1043459   ;;  %vm1224_vm3 = vcmask 1044484  }
  0x9b   :  { %v2708_v22 = vld [vmem:[#allocation8 + $0x170] ss:$8 sps:$4 sm:$0xff]   ;;  %1968 = vmatprep.subr.bf16.mxu1 %v2736_v17  ;;  %v3248_v24 = vld [vmem:[#allocation3 + $0x68] sm:$0xff]  ;;  %v3257_v30 = vld [vmem:[#allocation3 + $0xb0] sm:$0xff]  ;;  %v267_v32 = vunpack.c.h.bf16 %v3242_v20  ;;  %v273_v34 = vunpack.c.h.bf16 %v3244_v21  ;;  %v279_v39 = vunpack.c.h.bf16 %v3246_v23  ;;  %vm1226_vm4 = vcmask 1045509   ;;  %s3086_s7 = smov [#allocation17]  }
  0x9c   :  { %v3250_v25 = vld [vmem:[#allocation3 + $0x80] sm:$0xff]  ;;  %v3255_v29 = vld [vmem:[#allocation3 + $0x98] sm:$0xff]  ;;  %v3259_v31 = vld [vmem:[#allocation3 + $0xc8] sm:$0xff]  ;;  %v285_v41 = vunpack.c.h.bf16 %v3248_v24  ;;  %v303_v53 = vunpack.c.h.bf16 %v3257_v30  ;;  %vm1228_vm5 = vcmask 1046534   ;;  %vm1230_vm6 = vcmask 1047559   ;;  %s2467_s1 = sshll.u32 %s3086_s7, 4  ;;  %s2468_s1 = int_to_ptr.vmem [resolvable:$true] %s2467_s1 }
  0x9d   :  { %2014 = vmatpush1.bf16.msra.mxu0 %v2693_v5  ;;  %v3265_v36 = vld [vmem:[#allocation3 + $0xe0] sm:$0xff]  ;;  %v3267_v37 = vld [vmem:[#allocation3 + $0xf8] sm:$0xff]  ;;  %v3269_v38 = vld [vmem:[#allocation3 + $0x110] sm:$0xff]  ;;  %v291_v46 = vunpack.c.h.bf16 %v3250_v25  ;;  %v297_v48 = vunpack.c.h.bf16 %v3255_v29  ;;  %v309_v55 = vunpack.c.h.bf16 %v3259_v31  ;;  %v471_v5 = vadd.f32 %v267_v32, %v261_v27  ;;  %s3038_s2 = scalar_lea.vmem %s2468_s1, 256  ;;  %p3043_p9 = scmp.lt.s32.totalorder %s2468_s1, %s2468_s1 }
  0x9e   :  { %2015 = vmatprep.subr.bf16.mxu0 %v2694_v6  ;;  %1969 = vmatpush1.bf16.msra.mxu1 %v2738_v18  ;;  %v2709_v43 = vld [vmem:[#allocation8 + $0x184] ss:$8 sps:$4 sm:$0xff]   ;;  %v3277_v45 = vld [vmem:[#allocation3 + $0x140] sm:$0xff]  ;;  %v2711_v50 = vld [vmem:[#allocation8 + $0x180] ss:$8 sps:$4 sm:$0xff]   ;;  %v315_v61 = vunpack.c.h.bf16 %v3265_v36  ;;  %v321_v63 = vunpack.c.h.bf16 %v3267_v37  ;;  %v327_v4 = vunpack.c.h.bf16 %v3269_v38  ;;  %p3039_p8 = scmp.ne.s32.totalorder %s2468_s1, %s3038_s2  ;;  %p3044_p10 = scmp.lt.s32.totalorder %s3038_s2, %s3038_s2 }
  0x9f   :  { %v3275_v44 = vld [vmem:[#allocation3 + $0x128] sm:$0xff]  ;;  %4227 = vst [vmem:[#allocation25_spill] sm:$0xff] %v3277_v45  ;;  %v3283_v51 = vld [vmem:[#allocation3 + $0x158] sm:$0xff]  ;;  %v3285_v52 = vld [vmem:[#allocation3 + $0x170] sm:$0xff]  ;;  %v597_v33 = vadd.f32 %v303_v53, %v297_v48 }
  0xa0   :  { %4226 = vst [vmem:[#allocation24_spill] sm:$0xff] %v3275_v44  ;;  %4228 = vst [vmem:[#allocation26_spill] sm:$0xff] %v3283_v51  ;;  %v2712_v57 = vld [vmem:[#allocation8 + $0x194] ss:$8 sps:$4 sm:$0xff]   ;;  %v3291_v58 = vld [vmem:[#allocation3 + $0x188] sm:$0xff]  ;;  %v333_v6 = vunpack.c.h.bf16 %v3275_v44  ;;  %v345_v13 = vunpack.c.h.bf16 %v3283_v51  ;;  %v639_v27 = vadd.f32 %v315_v61, %v309_v55  ;;  %v681_v32 = vadd.f32 %v327_v4, %v321_v63  ;;  %p3045_p11 = por %p3044_p10, %p3043_p9 }
  0xa1   :  { %2016 = vmatpush1.bf16.msra.mxu0 %v2696_v7  ;;  %4229 = vst [vmem:[#allocation27_spill] sm:$0xff] %v3285_v52  ;;  %v3293_v59 = vld [vmem:[#allocation3 + $0x1a0] sm:$0xff]  ;;  %v3295_v60 = vld [vmem:[#allocation3 + $0x1b8] sm:$0xff]  ;;  %v3301_v1 = vld [vmem:[#allocation3 + $0x1d0] sm:$0xff]  ;;  %v598_v55 = vrot.slane %v597_v33, 4 }
  0xa2   :  { %2017 = vmatprep.subr.bf16.mxu0 %v2697_v8  ;;  %v3303_v2 = vld [vmem:[#allocation3 + $0x1e8] sm:$0xff]  ;;  %v3305_v3 = vld [vmem:[#allocation3 + $0x200] sm:$0xff]  ;;  %v3311_v8 = vld [vmem:[#allocation3 + $0x218] sm:$0xff]  ;;  %v640_v40 = vrot.slane %v639_v27, 4  ;;  %v682_v63 = vrot.slane %v681_v32, 4  ;;  %p3046_p12 = pnand %p3045_p11, %p3039_p8 }
  0xa3   :  { %v3323_v17 = vld [vmem:[#allocation3 + $0x278] sm:$0xff]  ;;  %v3325_v18 = vld [vmem:[#allocation3 + $0x290] sm:$0xff]  ;;  %v3331_v0 = vld [vmem:[#allocation3 + $0x2a8] sm:$0xff]  ;;  %v599_v56 = vadd.f32 %v598_v55, %v597_v33 }
  0xa4   :  { %4232 = vst [vmem:[#allocation30_spill] sm:$0xff] %v3323_v17  ;;  %4233 = vst [vmem:[#allocation31_spill] sm:$0xff] %v3325_v18  ;;  %v3333_v62 = vld [vmem:[#allocation3 + $0x2c0] sm:$0xff]  ;;  %v3339_v47 = vld [vmem:[#allocation3 + $0x2d8] sm:$0xff]  ;;  %v641_v42 = vadd.f32 %v640_v40, %v639_v27 }
  0xa5   :  { %2018 = vmatpush1.bf16.msra.mxu0 %v2699_v9  ;;  %v3313_v9 = vld [vmem:[#allocation3 + $0x230] sm:$0xff]  ;;  %4234 = vst [vmem:[#allocation32_spill] sm:$0xff] %v3331_v0  ;;  %4235 = vst [vmem:[#allocation33_spill] sm:$0xff] %v3333_v62  ;;  %v2748_v26 = vld [vmem:[#allocation8 + $0x34] ss:$8 sps:$4 sm:$0xff]   ;;  %v600_v51 = vrot.slane %v599_v56, 2 }
  0xa6   :  { %2019 = vmatprep.subr.bf16.mxu0 %v2700_v10  ;;  %v3315_v10 = vld [vmem:[#allocation3 + $0x248] sm:$0xff]  ;;  %4236 = vst [vmem:[#allocation34_spill] sm:$0xff] %v3339_v47  ;;  %v2750_v14 = vld [vmem:[#allocation8 + $0x30] ss:$8 sps:$4 sm:$0xff]   ;;  %v2724_v44 = vld [vmem:[#allocation8 + $0x1d4] ss:$8 sps:$4 sm:$0xff]  }
  0xa7   :  { %4230 = vst [vmem:[#allocation28_spill] sm:$0xff] %v3315_v10  ;;  %v2742_v28 = vld [vmem:[#allocation8 + $0x24] ss:$8 sps:$4 sm:$0xff]   ;;  %v2744_v54 = vld [vmem:[#allocation8 + $0x20] ss:$8 sps:$4 sm:$0xff]   ;;  %v601_v27 = vadd.f32 %v600_v51, %v599_v56 }
  0xa8   :  { %v2717_v35 = vld [vmem:[#allocation8 + $0x1a0] ss:$8 sps:$4 sm:$0xff]   ;;  %1970 = vmatprep.subr.bf16.mxu1 %v2742_v28  ;;  %v2720_v49 = vld [vmem:[#allocation8 + $0x1b0] ss:$8 sps:$4 sm:$0xff]   ;;  %v2721_v61 = vld [vmem:[#allocation8 + $0x1c4] ss:$8 sps:$4 sm:$0xff]  }
  0xa9   :  { %2020 = vmatpush1.bf16.msra.mxu0 %v2702_v11  ;;  %v339_v11 = vunpack.c.h.bf16 %v3277_v45  ;;  %1971 = vmatpush1.bf16.msra.mxu1 %v2744_v54  ;;  %v513_v54 = vadd.f32 %v279_v39, %v273_v34  ;;  %v2762_v45 = vld [vmem:[#allocation8 + $0x50] ss:$8 sps:$4 sm:$0xff]  }
  0xaa   :  { %2021 = vmatprep.subr.bf16.mxu0 %v2703_v12  ;;  %v2715_v12 = vld [vmem:[#allocation8 + $0x1a4] ss:$8 sps:$4 sm:$0xff]   ;;  %1972 = vmatprep.subr.bf16.mxu1 %v2748_v26  ;;  %v2756_v26 = vld [vmem:[#allocation8 + $0x40] ss:$8 sps:$4 sm:$0xff]  }
  0xab   :  { %v723_v34 = vadd.f32 %v339_v11, %v333_v6  ;;  %v514_v48 = vrot.slane %v513_v54, 4 }
  0xad   :  { %2022 = vmatpush1.bf16.msra.mxu0 %v2705_v15  ;;  %v2714_v15 = vld [vmem:[#allocation8 + $0x190] ss:$8 sps:$4 sm:$0xff]   ;;  %1973 = vmatpush1.bf16.msra.mxu1 %v2750_v14  ;;  %v724_v4 = vrot.slane %v723_v34, 4  ;;  %v515_v6 = vadd.f32 %v514_v48, %v513_v54 }
  0xae   :  { %2023 = vmatprep.subr.bf16.mxu0 %v2706_v16  ;;  %v3321_v16 = vld [vmem:[#allocation3 + $0x260] sm:$0xff] }
  0xaf   :  { %4231 = vst [vmem:[#allocation29_spill] sm:$0xff] %v3321_v16  ;;  %v516_v14 = vrot.slane %v515_v6, 2  ;;  %v2726_v48 = vld [vmem:[#allocation8 + $0x1d0] ss:$8 sps:$4 sm:$0xff]  }
  0xb1   :  { %2024 = vmatpush1.bf16.msra.mxu0 %v2708_v22  ;;  %v351_v22 = vunpack.c.h.bf16 %v3285_v52 }
  0xb2   :  { %2025 = vmatprep.subr.bf16.mxu0 %v2709_v43  ;;  %v3341_v43 = vld [vmem:[#allocation3 + $0x2f0] sm:$0xff] }
  0xb3   :  { %v765_v39 = vadd.f32 %v351_v22, %v345_v13  ;;  %v2760_v13 = vld [vmem:[#allocation8 + $0x54] ss:$8 sps:$4 sm:$0xff]   ;;  %v2723_v22 = vld [vmem:[#allocation8 + $0x1c0] ss:$8 sps:$4 sm:$0xff]  }
  0xb5   :  { %2026 = vmatpush1.bf16.msra.mxu0 %v2711_v50  ;;  %v725_v50 = vadd.f32 %v724_v4, %v723_v34 }
  0xb6   :  { %2027 = vmatprep.subr.bf16.mxu0 %v2712_v57  ;;  %v2718_v57 = vld [vmem:[#allocation8 + $0x1b4] ss:$8 sps:$4 sm:$0xff]  }
  0xb7   :  { %v726_v54 = vrot.slane %v725_v50, 2 }
  0xb9   :  { %2028 = vmatpush1.bf16.msra.mxu0 %v2714_v15  ;;  %v766_v15 = vrot.slane %v765_v39, 4  ;;  %v727_v34 = vadd.f32 %v726_v54, %v725_v50  ;;  %v2768_v50 = vld [vmem:[#allocation8 + $0x60] ss:$8 sps:$4 sm:$0xff]   ;;  %v4240_v54 = vunpack.c.h.bf16 %v3301_v1 }
  0xba   :  { %2029 = vmatprep.subr.bf16.mxu0 %v2715_v12  ;;  %v555_v12 = vadd.f32 %v291_v46, %v285_v41  ;;  %v2754_v41 = vld [vmem:[#allocation8 + $0x44] ss:$8 sps:$4 sm:$0xff]   ;;  %v472_v46 = vrot.slane %v471_v5, 4 }
  0xbb   :  { %1974 = vmatprep.subr.bf16.mxu1 %v2754_v41  ;;  %v767_v7 = vadd.f32 %v766_v15, %v765_v39  ;;  %v642_v41 = vrot.slane %v641_v42, 2 }
  0xbc   :  { %v556_v53 = vrot.slane %v555_v12, 4  ;;  %v473_v28 = vadd.f32 %v472_v46, %v471_v5  ;;  %1975 = vmatpush1.bf16.msra.mxu1 %v2756_v26  ;;  %v517_v46 = vadd.f32 %v516_v14, %v515_v6  ;;  %v4237_v14 = vunpack.c.h.bf16 %v3291_v58 }
  0xbd   :  { %2030 = vmatpush1.bf16.msra.mxu0 %v2717_v35  ;;  %v683_v35 = vadd.f32 %v682_v63, %v681_v32  ;;  %1976 = vmatprep.subr.bf16.mxu1 %v2760_v13  ;;  %v2766_v32 = vld [vmem:[#allocation8 + $0x64] ss:$8 sps:$4 sm:$0xff]   ;;  %v643_v15 = vadd.f32 %v642_v41, %v641_v42 }
  0xbe   :  { %2031 = vmatprep.subr.bf16.mxu0 %v2718_v57  ;;  %v557_v11 = vadd.f32 %v556_v53, %v555_v12  ;;  %v474_v52 = vrot.slane %v473_v28, 2  ;;  %v768_v12 = vrot.slane %v767_v7, 2  ;;  %v518_v53 = vrot.slane %v517_v46, 1  ;;  %v2727_v63 = vld [vmem:[#allocation8 + $0x1e4] ss:$8 sps:$4 sm:$0xff]  }
  0xbf   :  { %v684_v5 = vrot.slane %v683_v35, 2  ;;  %v644_v4 = vrot.slane %v643_v15, 1 }
  0xc0   :  { %v558_v57 = vrot.slane %v557_v11, 2  ;;  %v475_v33 = vadd.f32 %v474_v52, %v473_v28  ;;  %v769_v39 = vadd.f32 %v768_v12, %v767_v7  ;;  %1977 = vmatpush1.bf16.msra.mxu1 %v2762_v45  ;;  %v728_v52 = vrot.slane %v727_v34, 1 }
  0xc1   :  { %2032 = vmatpush1.bf16.msra.mxu0 %v2720_v49  ;;  %v685_v49 = vadd.f32 %v684_v5, %v683_v35  ;;  %1978 = vmatprep.subr.bf16.mxu1 %v2766_v32  ;;  %v3399_v42 = vadd.f32 %v518_v53, %v517_v46  ;;  %v3405_v6 = vadd.f32 %v644_v4, %v643_v15  ;;  %v2729_v35 = vld [vmem:[#allocation8 + $0x1e0] ss:$8 sps:$4 sm:$0xff]   ;;  %v4239_v5 = vunpack.c.h.bf16 %v3295_v60 }
  0xc2   :  { %2033 = vmatprep.subr.bf16.mxu0 %v2721_v61  ;;  %v559_v40 = vadd.f32 %v558_v57, %v557_v11  ;;  %v476_v26 = vrot.slane %v475_v33, 1  ;;  %v602_v61 = vrot.slane %v601_v27, 1  ;;  %v770_v28 = vrot.slane %v769_v39, 1 }
  0xc3   :  { %v686_v13 = vrot.slane %v685_v49, 1  ;;  %v4238_v57 = vunpack.c.h.bf16 %v3293_v59  ;;  %v849_v12 = vadd.f32 %v4240_v54, %v4239_v5  ;;  %v4242_v46 = vunpack.c.h.bf16 %v3305_v3 }
  0xc4   :  { %v560_v55 = vrot.slane %v559_v40, 1  ;;  %v3397_v51 = vadd.f32 %v476_v26, %v475_v33  ;;  %v3403_v7 = vadd.f32 %v602_v61, %v601_v27  ;;  %v3411_v45 = vadd.f32 %v770_v28, %v769_v39  ;;  %1979 = vmatpush1.bf16.msra.mxu1 %v2768_v50  ;;  %v2741_v50 = vld [vmem:[#allocation8 + $0x204] ss:$8 sps:$4 sm:$0xff]  }
  0xc5   :  { %2034 = vmatpush1.bf16.msra.mxu0 %v2723_v22  ;;  %v3407_v11 = vadd.f32 %v686_v13, %v685_v49  ;;  %v2772_v22 = vld [vmem:[#allocation8 + $0x74] ss:$8 sps:$4 sm:$0xff]   ;;  %v807_v41 = vadd.f32 %v4238_v57, %v4237_v14  ;;  %v4241_v33 = vunpack.c.h.bf16 %v3303_v2  ;;  %v4243_v27 = vunpack.c.h.bf16 %v3311_v8  ;;  %v2774_v14 = vld [vmem:[#allocation8 + $0x70] ss:$8 sps:$4 sm:$0xff]  }
  0xc6   :  { %2035 = vmatprep.subr.bf16.mxu0 %v2724_v44  ;;  %v3401_v56 = vadd.f32 %v560_v55, %v559_v40  ;;  %v3409_v44 = vadd.f32 %v728_v52, %v727_v34  ;;  %v4244_v32 = vunpack.c.h.bf16 %v3313_v9  ;;  %v2733_v49 = vld [vmem:[#allocation8 + $0x1f4] ss:$8 sps:$4 sm:$0xff]   ;;  %v4245_v34 = vunpack.c.h.bf16 %v3315_v10  ;;  %1980 = vmatprep.subr.bf16.mxu1 %v2772_v22 }
  0xc7   :  { %v891_v40 = vadd.f32 %v4242_v46, %v4241_v33  ;;  %v4246_v39 = vunpack.c.h.bf16 %v3321_v16  ;;  %v4247_v26 = vunpack.c.h.bf16 %v3323_v17  ;;  %v4248_v53 = vunpack.c.h.bf16 %v3325_v18  ;;  %v2780_v18 = vld [vmem:[#allocation8 + $0x80] ss:$8 sps:$4 sm:$0xff]  }
  0xc8   :  { %v933_v15 = vadd.f32 %v4244_v32, %v4243_v27  ;;  %v4249_v61 = vunpack.c.h.bf16 %v3331_v0  ;;  %v4250_v4 = vunpack.c.h.bf16 %v3333_v62  ;;  %v4251_v52 = vunpack.c.h.bf16 %v3339_v47  ;;  %1981 = vmatpush1.bf16.msra.mxu1 %v2774_v14 }
  0xc9   :  { %2036 = vmatpush1.bf16.msra.mxu0 %v2726_v48  ;;  %v975_v48 = vadd.f32 %v4246_v39, %v4245_v34  ;;  %v1017_v55 = vadd.f32 %v4248_v53, %v4247_v26  ;;  %v808_v57 = vrot.slane %v807_v41, 4  ;;  %v850_v5 = vrot.slane %v849_v12, 4  ;;  %v2778_v39 = vld [vmem:[#allocation8 + $0x84] ss:$8 sps:$4 sm:$0xff]   ;;  %v2735_v26 = vld [vmem:[#allocation8 + $0x1f0] ss:$8 sps:$4 sm:$0xff]  }
  0xca   :  { %2037 = vmatprep.subr.bf16.mxu0 %v2727_v63  ;;  %v1059_v13 = vadd.f32 %v4250_v4, %v4249_v61  ;;  %v4252_v63 = vunpack.c.h.bf16 %v3341_v43  ;;  %v892_v54 = vrot.slane %v891_v40, 4  ;;  %v934_v33 = vrot.slane %v933_v15, 4  ;;  %1982 = vmatprep.subr.bf16.mxu1 %v2778_v39 }
  0xcb   :  { %v976_v46 = vrot.slane %v975_v48, 4  ;;  %v1018_v27 = vrot.slane %v1017_v55, 4  ;;  %v809_v53 = vadd.f32 %v808_v57, %v807_v41  ;;  %v851_v61 = vadd.f32 %v850_v5, %v849_v12 }
  0xcc   :  { %v1101_v28 = vadd.f32 %v4252_v63, %v4251_v52  ;;  %v1060_v32 = vrot.slane %v1059_v13, 4  ;;  %v893_v4 = vadd.f32 %v892_v54, %v891_v40  ;;  %v935_v47 = vadd.f32 %v934_v33, %v933_v15  ;;  %v2784_v15 = vld [vmem:[#allocation8 + $0x94] ss:$8 sps:$4 sm:$0xff]   ;;  %1983 = vmatpush1.bf16.msra.mxu1 %v2780_v18 }
  0xcd   :  { %2038 = vmatpush1.bf16.msra.mxu0 %v2729_v35  ;;  %v977_v52 = vadd.f32 %v976_v46, %v975_v48  ;;  %v1019_v63 = vadd.f32 %v1018_v27, %v1017_v55  ;;  %v810_v17 = vrot.slane %v809_v53, 2  ;;  %v852_v16 = vrot.slane %v851_v61, 2  ;;  %1984 = vmatprep.subr.bf16.mxu1 %v2784_v15  ;;  %v2792_v15 = vld [vmem:[#allocation8 + $0xa0] ss:$8 sps:$4 sm:$0xff]  }
  0xce   :  { %v1102_v34 = vrot.slane %v1101_v28, 4  ;;  %2039 = vmatprep.subr.bf16.mxu0 %v2733_v49  ;;  %v1061_v62 = vadd.f32 %v1060_v32, %v1059_v13  ;;  %v894_v10 = vrot.slane %v893_v4, 2  ;;  %v936_v22 = vrot.slane %v935_v47, 2  ;;  %v2786_v32 = vld [vmem:[#allocation8 + $0x90] ss:$8 sps:$4 sm:$0xff]  }
  0xcf   :  { %v978_v35 = vrot.slane %v977_v52, 2  ;;  %v1020_v41 = vrot.slane %v1019_v63, 2  ;;  %v811_v49 = vadd.f32 %v810_v17, %v809_v53  ;;  %v853_v48 = vadd.f32 %v852_v16, %v851_v61 }
  0xd0   :  { %v1103_v0 = vadd.f32 %v1102_v34, %v1101_v28  ;;  %v1062_v12 = vrot.slane %v1061_v62, 2  ;;  %v895_v55 = vadd.f32 %v894_v10, %v893_v4  ;;  %v937_v13 = vadd.f32 %v936_v22, %v935_v47  ;;  %v2790_v10 = vld [vmem:[#allocation8 + $0xa4] ss:$8 sps:$4 sm:$0xff]   ;;  %1985 = vmatpush1.bf16.msra.mxu1 %v2786_v32 }
  0xd1   :  { %2040 = vmatpush1.bf16.msra.mxu0 %v2735_v26  ;;  %v979_v28 = vadd.f32 %v978_v35, %v977_v52  ;;  %v1021_v57 = vadd.f32 %v1020_v41, %v1019_v63  ;;  %v812_v14 = vrot.slane %v811_v49, 1  ;;  %v854_v33 = vrot.slane %v853_v48, 1  ;;  %1986 = vmatprep.subr.bf16.mxu1 %v2790_v10 }
  0xd2   :  { %v1104_v40 = vrot.slane %v1103_v0, 2  ;;  %v1063_v5 = vadd.f32 %v1062_v12, %v1061_v62  ;;  %2052 = vmatprep.subr.bf16.mxu0 %v2741_v50  ;;  %v896_v46 = vrot.slane %v895_v55, 1  ;;  %v938_v27 = vrot.slane %v937_v13, 1 }
  0xd3   :  { %v980_v34 = vrot.slane %v979_v28, 1  ;;  %v1022_v39 = vrot.slane %v1021_v57, 1  ;;  %v813_v47 = vadd.f32 %v812_v14, %v811_v49  ;;  %v855_v16 = vadd.f32 %v854_v33, %v853_v48 }
  0xd4   :  { %v1105_v54 = vadd.f32 %v1104_v40, %v1103_v0  ;;  %v1064_v26 = vrot.slane %v1063_v5, 1  ;;  %v897_v53 = vadd.f32 %v896_v46, %v895_v55  ;;  %v939_v61 = vadd.f32 %v938_v27, %v937_v13  ;;  %1987 = vmatpush1.bf16.msra.mxu1 %v2792_v15 }
  0xd5   :  { %v981_v62 = vadd.f32 %v980_v34, %v979_v28  ;;  %v1023_v0 = vadd.f32 %v1022_v39, %v1021_v57  ;;  %v1246_v63 = vsel %vm1218_vm0, %v3399_v42, %v3397_v51  ;;  %v1288_v18 = vsel %vm1218_vm0, %v855_v16, %v813_v47  ;;  %v2802_v34 = vld [vmem:[#allocation8 + $0xc4] ss:$8 sps:$4 sm:$0xff]  }
  0xd6   :  { %v1106_v17 = vrot.slane %v1105_v54, 1  ;;  %v1065_v4 = vadd.f32 %v1064_v26, %v1063_v5  ;;  %v4253_v50 = vunpack.c.l.bf16 %v3240_v19  ;;  %v4254_v22 = vunpack.c.l.bf16 %v3242_v20 }
  0xd7   :  { %v4255_v41 = vunpack.c.l.bf16 %v3244_v21  ;;  %v4256_v12 = vunpack.c.l.bf16 %v3246_v23  ;;  %v1247_v49 = vsel %vm1220_vm1, %v3401_v56, %v1246_v63  ;;  %v1289_v48 = vsel %vm1220_vm1, %v897_v53, %v1288_v18  ;;  %v2796_v23 = vld [vmem:[#allocation8 + $0xb4] ss:$8 sps:$4 sm:$0xff]  }
  0xd8   :  { %v1107_v52 = vadd.f32 %v1106_v17, %v1105_v54  ;;  %v464_v35 = vadd.f32 %v4254_v22, %v4253_v50  ;;  %v4257_v51 = vunpack.c.l.bf16 %v3248_v24  ;;  %v4258_v42 = vunpack.c.l.bf16 %v3250_v25  ;;  %1988 = vmatprep.subr.bf16.mxu1 %v2796_v23 }
  0xd9   :  { %v506_v40 = vadd.f32 %v4256_v12, %v4255_v41  ;;  %v4259_v20 = vunpack.c.l.bf16 %v3255_v29  ;;  %v4260_v55 = vunpack.c.l.bf16 %v3257_v30  ;;  %v1248_v13 = vsel %vm1222_vm2, %v3403_v7, %v1247_v49  ;;  %v2798_v7 = vld [vmem:[#allocation8 + $0xb0] ss:$8 sps:$4 sm:$0xff]  }
  0xda   :  { %v548_v19 = vadd.f32 %v4258_v42, %v4257_v51  ;;  %v1290_v28 = vsel %vm1222_vm2, %v939_v61, %v1289_v48  ;;  %v465_v56 = vrot.slane %v464_v35, 4  ;;  %v1249_v24 = vsel %vm1224_vm3, %v3405_v6, %v1248_v13  ;;  %1989 = vmatpush1.bf16.msra.mxu1 %v2798_v7  ;;  %v4265_v41 = vld [vmem:[#allocation24_spill] sm:$0xff] }
  0xdb   :  { %v590_v21 = vadd.f32 %v4260_v55, %v4259_v20  ;;  %v507_v57 = vrot.slane %v506_v40, 4  ;;  %v1291_v25 = vsel %vm1224_vm3, %v981_v62, %v1290_v28  ;;  %v1250_v29 = vsel %vm1226_vm4, %v3407_v11, %v1249_v24  ;;  %1990 = vmatprep.subr.bf16.mxu1 %v2802_v34  ;;  %v4269_v20 = vld [vmem:[#allocation26_spill] sm:$0xff] }
  0xdc   :  { %v549_v5 = vrot.slane %v548_v19, 4  ;;  %v1292_v30 = vsel %vm1226_vm4, %v1023_v0, %v1291_v25  ;;  %v466_v14 = vadd.f32 %v465_v56, %v464_v35  ;;  %v1251_v46 = vsel %vm1228_vm5, %v3409_v44, %v1250_v29  ;;  %v2810_v25 = vld [vmem:[#allocation8 + $0xd0] ss:$8 sps:$4 sm:$0xff]  }
  0xdd   :  { %v591_v54 = vrot.slane %v590_v21, 4  ;;  %v508_v33 = vadd.f32 %v507_v57, %v506_v40  ;;  %v1293_v27 = vsel %vm1228_vm5, %v1065_v4, %v1292_v30  ;;  %v1252_v39 = vsel %vm1230_vm6, %v3411_v45, %v1251_v46  ;;  %v4267_v40 = vld [vmem:[#allocation25_spill] sm:$0xff] }
  0xde   :  { %v550_v32 = vadd.f32 %v549_v5, %v548_v19  ;;  %v1294_v11 = vsel %vm1230_vm6, %v1107_v52, %v1293_v27  ;;  %v467_v26 = vrot.slane %v466_v14, 2  ;;  %v1363_v10 = vmul.f32 0.0625, %v1252_v39  ;;  %v2804_v52 = vld [vmem:[#allocation8 + $0xc0] ss:$8 sps:$4 sm:$0xff]  }
  0xdf   :  { %v592_v6 = vadd.f32 %v591_v54, %v590_v21  ;;  %v509_v17 = vrot.slane %v508_v33, 2  ;;  %v1369_v47 = vmul.f32 0.0625, %v1294_v11  ;;  %v4261_v44 = vunpack.c.l.bf16 %v3259_v31  ;;  %v2808_v31 = vld [vmem:[#allocation8 + $0xd4] ss:$8 sps:$4 sm:$0xff]   ;;  %1991 = vmatpush1.bf16.msra.mxu1 %v2804_v52 }
  0xe0   :  { %v551_v16 = vrot.slane %v550_v32, 2  ;;  %v468_v61 = vadd.f32 %v467_v26, %v466_v14  ;;  %v4262_v0 = vunpack.c.l.bf16 %v3265_v36  ;;  %v4263_v63 = vunpack.c.l.bf16 %v3267_v37  ;;  %v4271_v21 = vld [vmem:[#allocation27_spill] sm:$0xff]  ;;  %1992 = vmatprep.subr.bf16.mxu1 %v2808_v31 }
  0xe1   :  { %v593_v53 = vrot.slane %v592_v6, 2  ;;  %v510_v62 = vadd.f32 %v509_v17, %v508_v33  ;;  %v4264_v18 = vunpack.c.l.bf16 %v3269_v38  ;;  %v1375_v50 = vpack.c.bf16 %v1369_v47, %v1363_v10  ;;  %v2814_v14 = vld [vmem:[#allocation8 + $0xe4] ss:$8 sps:$4 sm:$0xff]  }
  0xe2   :  { %v632_v4 = vadd.f32 %v4262_v0, %v4261_v44  ;;  %v552_v22 = vadd.f32 %v551_v16, %v550_v32  ;;  %v4266_v12 = vunpack.c.l.bf16 %v4265_v41  ;;  %v4268_v15 = vunpack.c.l.bf16 %v4267_v40 }
  0xe3   :  { %v674_v45 = vadd.f32 %v4264_v18, %v4263_v63  ;;  %v594_v35 = vadd.f32 %v593_v53, %v592_v6  ;;  %v469_v48 = vrot.slane %v468_v61, 1  ;;  %v511_v36 = vrot.slane %v510_v62, 1  ;;  %2041 = vmatprep.mubr.bf16.mxu0 %v1375_v50  ;;  %1993 = vmatpush1.bf16.msra.mxu1 %v2810_v25 }
  0xe4   :  { %v716_v49 = vadd.f32 %v4268_v15, %v4266_v12  ;;  %v633_v51 = vrot.slane %v632_v4, 4  ;;  %v446_v37 = vunpack.c.l.bf16 %v3341_v43  ;;  %v553_v38 = vrot.slane %v552_v22, 1  ;;  %1994 = vmatprep.subr.bf16.mxu1 %v2814_v14  ;;  %v4289_v14 = vld [vmem:[#allocation32_spill] sm:$0xff] }
  0xe5   :  { %v675_v42 = vrot.slane %v674_v45, 4  ;;  %v4270_v55 = vunpack.c.l.bf16 %v4269_v20  ;;  %v4272_v23 = vunpack.c.l.bf16 %v4271_v21  ;;  %v3500_v28 = vadd.f32 %v469_v48, %v468_v61 }
  0xe6   :  { %v717_v19 = vrot.slane %v716_v49, 4  ;;  %v595_v56 = vrot.slane %v594_v35, 1  ;;  %v634_v57 = vadd.f32 %v633_v51, %v632_v4  ;;  %v3502_v5 = vadd.f32 %v511_v36, %v510_v62 }
  0xe7   :  { %v758_v13 = vadd.f32 %v4272_v23, %v4270_v55  ;;  %v676_v24 = vadd.f32 %v675_v42, %v674_v45  ;;  %v3504_v54 = vadd.f32 %v553_v38, %v552_v22  ;;  %v4273_v46 = vunpack.c.l.bf16 %v3291_v58  ;;  %v4283_v55 = vld [vmem:[#allocation29_spill] sm:$0xff] }
  0xe8   :  { %v718_v29 = vadd.f32 %v717_v19, %v716_v49  ;;  %v635_v33 = vrot.slane %v634_v57, 2  ;;  %v4274_v27 = vunpack.c.l.bf16 %v3293_v59  ;;  %v4275_v6 = vunpack.c.l.bf16 %v3295_v60  ;;  %v2816_v60 = vld [vmem:[#allocation8 + $0xe0] ss:$8 sps:$4 sm:$0xff]   ;;  %v2822_v49 = vld [vmem:[#allocation8 + $0xf0] ss:$8 sps:$4 sm:$0xff]  }
  0xe9   :  { %v759_v30 = vrot.slane %v758_v13, 4  ;;  %v677_v7 = vrot.slane %v676_v24, 2  ;;  %v4276_v34 = vunpack.c.l.bf16 %v3301_v1  ;;  %v4277_v17 = vunpack.c.l.bf16 %v3303_v2  ;;  %v2820_v2 = vld [vmem:[#allocation8 + $0xf4] ss:$8 sps:$4 sm:$0xff]   ;;  %1995 = vmatpush1.bf16.msra.mxu1 %v2816_v60 }
  0xea   :  { %v800_v32 = vadd.f32 %v4274_v27, %v4273_v46  ;;  %v719_v11 = vrot.slane %v718_v29, 2  ;;  %v4278_v10 = vunpack.c.l.bf16 %v3305_v3  ;;  %v4279_v16 = vunpack.c.l.bf16 %v3311_v8  ;;  %1996 = vmatprep.subr.bf16.mxu1 %v2820_v2  ;;  %v4281_v19 = vld [vmem:[#allocation28_spill] sm:$0xff] }
  0xeb   :  { %v842_v39 = vadd.f32 %v4276_v34, %v4275_v6  ;;  %v760_v26 = vadd.f32 %v759_v30, %v758_v13  ;;  %v4280_v53 = vunpack.c.l.bf16 %v3313_v9  ;;  %v636_v61 = vadd.f32 %v635_v33, %v634_v57  ;;  %v4285_v13 = vld [vmem:[#allocation30_spill] sm:$0xff] }
  0xec   :  { %v884_v47 = vadd.f32 %v4278_v10, %v4277_v17  ;;  %v678_v59 = vadd.f32 %v677_v7, %v676_v24  ;;  %v801_v62 = vrot.slane %v800_v32, 4  ;;  %v720_v1 = vadd.f32 %v719_v11, %v718_v29  ;;  %v4291_v7 = vld [vmem:[#allocation33_spill] sm:$0xff]  ;;  %v4293_v10 = vld [vmem:[#allocation34_spill] sm:$0xff] }
  0xed   :  { %v926_v58 = vadd.f32 %v4280_v53, %v4279_v16  ;;  %v843_v44 = vrot.slane %v842_v39, 4  ;;  %v761_v0 = vrot.slane %v760_v26, 2  ;;  %v637_v18 = vrot.slane %v636_v61, 1  ;;  %1997 = vmatpush1.bf16.msra.mxu1 %v2822_v49  ;;  %v3550_v49 = vld [vmem:[#allocation3 + $0x18] sm:$0xff] }
  0xee   :  { %v885_v4 = vrot.slane %v884_v47, 4  ;;  %v679_v3 = vrot.slane %v678_v59, 1  ;;  %v802_v45 = vadd.f32 %v801_v62, %v800_v32  ;;  %v721_v8 = vrot.slane %v720_v1, 1 }
  0xef   :  { %v927_v63 = vrot.slane %v926_v58, 4  ;;  %v844_v52 = vadd.f32 %v843_v44, %v842_v39  ;;  %v762_v50 = vadd.f32 %v761_v0, %v760_v26  ;;  %v596_v41 = vadd.f32 %v595_v56, %v594_v35  ;;  %v4287_v35 = vld [vmem:[#allocation31_spill] sm:$0xff] }
  0xf0   :  { %v886_v9 = vadd.f32 %v885_v4, %v884_v47  ;;  %v638_v12 = vadd.f32 %v637_v18, %v636_v61  ;;  %v803_v40 = vrot.slane %v802_v45, 2  ;;  %v680_v31 = vadd.f32 %v679_v3, %v678_v59 }
  0xf1   :  { %v928_v22 = vadd.f32 %v927_v63, %v926_v58  ;;  %v845_v15 = vrot.slane %v844_v52, 2  ;;  %v722_v48 = vadd.f32 %v721_v8, %v720_v1  ;;  %v4282_v20 = vunpack.c.l.bf16 %v4281_v19 }
  0xf2   :  { %v887_v36 = vrot.slane %v886_v9, 2  ;;  %v804_v42 = vadd.f32 %v803_v40, %v802_v45  ;;  %v4284_v21 = vunpack.c.l.bf16 %v4283_v55  ;;  %v4286_v57 = vunpack.c.l.bf16 %v4285_v13  ;;  %v3545_v45 = vld [vmem:[#allocation3] sm:$0xff] }
  0xf3   :  { %v929_v51 = vrot.slane %v928_v22, 2  ;;  %v846_v38 = vadd.f32 %v845_v15, %v844_v52  ;;  %v4288_v56 = vunpack.c.l.bf16 %v4287_v35  ;;  %v763_v25 = vrot.slane %v762_v50, 1  ;;  %v3561_v13 = vld [vmem:[#allocation3 + $0x60] sm:$0xff] }
  0xf4   :  { %v968_v23 = vadd.f32 %v4284_v21, %v4282_v20  ;;  %v888_v29 = vadd.f32 %v887_v36, %v886_v9  ;;  %v4290_v33 = vunpack.c.l.bf16 %v4289_v14  ;;  %v4292_v46 = vunpack.c.l.bf16 %v4291_v7  ;;  %v3555_v20 = vld [vmem:[#allocation3 + $0x30] sm:$0xff] }
  0xf5   :  { %v1010_v24 = vadd.f32 %v4288_v56, %v4286_v57  ;;  %v930_v30 = vadd.f32 %v929_v51, %v928_v22  ;;  %v805_v32 = vrot.slane %v804_v42, 1  ;;  %v847_v6 = vrot.slane %v846_v38, 1  ;;  %v3563_v57 = vld [vmem:[#allocation3 + $0x78] sm:$0xff]  ;;  %v3576_v7 = vld [vmem:[#allocation3 + $0xf0] sm:$0xff] }
  0xf6   :  { %v1052_v27 = vadd.f32 %v4292_v46, %v4290_v33  ;;  %v969_v34 = vrot.slane %v968_v23, 4  ;;  %v889_v11 = vrot.slane %v888_v29, 1  ;;  %v4294_v47 = vunpack.c.l.bf16 %v4293_v10  ;;  %v3574_v33 = vld [vmem:[#allocation3 + $0xd8] sm:$0xff] }
  0xf7   :  { %v1011_v39 = vrot.slane %v1010_v24, 4  ;;  %v931_v26 = vrot.slane %v930_v30, 1  ;;  %v806_v53 = vadd.f32 %v805_v32, %v804_v42  ;;  %v848_v58 = vadd.f32 %v847_v6, %v846_v38  ;;  %v2759_v46 = vld [vmem:[#allocation8 + $0x234] ss:$8 sps:$4 sm:$0xff]  }
  0xf8   :  { %v1053_v17 = vrot.slane %v1052_v27, 4  ;;  %v1094_v16 = vadd.f32 %v446_v37, %v4294_v47  ;;  %v970_v61 = vadd.f32 %v969_v34, %v968_v23  ;;  %v890_v62 = vadd.f32 %v889_v11, %v888_v29  ;;  %v3570_v29 = vld [vmem:[#allocation3 + $0xc0] sm:$0xff]  ;;  %v3589_v47 = vld [vmem:[#allocation3 + $0x138] sm:$0xff] }
  0xf9   :  { %v1012_v59 = vadd.f32 %v1011_v39, %v1010_v24  ;;  %v932_v44 = vadd.f32 %v931_v26, %v930_v30  ;;  %v1239_v63 = vsel %vm1218_vm0, %v3502_v5, %v3500_v28  ;;  %v1281_v2 = vsel %vm1218_vm0, %v848_v58, %v806_v53  ;;  %v3582_v39 = vld [vmem:[#allocation3 + $0x108] sm:$0xff]  ;;  %v3584_v11 = vld [vmem:[#allocation3 + $0x120] sm:$0xff]  ;;  %4296 = vst [vmem:[#allocation25_spill] sm:$0xff] %v3589_v47 }
  0xfa   :  { %v1054_v60 = vadd.f32 %v1053_v17, %v1052_v27  ;;  %v1095_v1 = vrot.slane %v1094_v16, 4  ;;  %v971_v0 = vrot.slane %v970_v61, 2  ;;  %v1240_v43 = vsel %vm1220_vm1, %v3504_v54, %v1239_v63  ;;  %4295 = vst [vmem:[#allocation24_spill] sm:$0xff] %v3584_v11  ;;  %v2751_v58 = vld [vmem:[#allocation8 + $0x220] ss:$8 sps:$4 sm:$0xff]  }
  0xfb   :  { %v1013_v4 = vrot.slane %v1012_v59, 2  ;;  %v1282_v37 = vsel %vm1220_vm1, %v890_v62, %v1281_v2  ;;  %v764_v52 = vadd.f32 %v763_v25, %v762_v50  ;;  %v1241_v22 = vsel %vm1222_vm2, %v596_v41, %v1240_v43  ;;  %v3557_v41 = vld [vmem:[#allocation3 + $0x48] sm:$0xff]  ;;  %v2747_v2 = vld [vmem:[#allocation8 + $0x214] ss:$8 sps:$4 sm:$0xff]  }
  0xfc   :  { %v1055_v18 = vrot.slane %v1054_v60, 2  ;;  %v1096_v3 = vadd.f32 %v1095_v1, %v1094_v16  ;;  %v972_v8 = vadd.f32 %v971_v0, %v970_v61  ;;  %v1242_v28 = vsel %vm1224_vm3, %v638_v12, %v1241_v22  ;;  %v3568_v25 = vld [vmem:[#allocation3 + $0xa8] sm:$0xff]  ;;  %v3591_v16 = vld [vmem:[#allocation3 + $0x150] sm:$0xff] }
  0xfd   :  { %v1014_v9 = vadd.f32 %v1013_v4, %v1012_v59  ;;  %v1283_v5 = vsel %vm1222_vm2, %v932_v44, %v1282_v37  ;;  %v1243_v54 = vsel %vm1226_vm4, %v680_v31, %v1242_v28  ;;  %v259_v12 = vunpack.c.h.bf16 %v3545_v45  ;;  %4297 = vst [vmem:[#allocation26_spill] sm:$0xff] %v3591_v16  ;;  %v2739_v59 = vld [vmem:[#allocation8 + $0x200] ss:$8 sps:$4 sm:$0xff]   ;;  %v3650_v37 = vld [vmem:[#allocation3 + $0x2b8] sm:$0xff]  ;;  %v2765_v4 = vld [vmem:[#allocation8 + $0x244] ss:$8 sps:$4 sm:$0xff]  }
  0xfe   :  { %v1056_v40 = vadd.f32 %v1055_v18, %v1054_v60  ;;  %v1097_v15 = vrot.slane %v1096_v3, 2  ;;  %v973_v36 = vrot.slane %v972_v8, 1  ;;  %v1244_v19 = vsel %vm1228_vm5, %v722_v48, %v1243_v54  ;;  %v3566_v48 = vld [vmem:[#allocation3 + $0x90] sm:$0xff]  ;;  %v3597_v44 = vld [vmem:[#allocation3 + $0x168] sm:$0xff]  ;;  %v3599_v60 = vld [vmem:[#allocation3 + $0x180] sm:$0xff]  ;;  %4303 = vst [vmem:[#allocation32_spill] sm:$0xff] %v3650_v37 }
  0xff   :  { %v1015_v51 = vrot.slane %v1014_v9, 1  ;;  %v1245_v23 = vsel %vm1230_vm6, %v764_v52, %v1244_v19  ;;  %v265_v30 = vunpack.c.h.bf16 %v3550_v49  ;;  %v271_v27 = vunpack.c.h.bf16 %v3555_v20  ;;  %4298 = vst [vmem:[#allocation27_spill] sm:$0xff] %v3597_v44  ;;  %v3604_v18 = vld [vmem:[#allocation3 + $0x198] sm:$0xff]  ;;  %v3644_v54 = vld [vmem:[#allocation3 + $0x2a0] sm:$0xff]  ;;  %v3658_v17 = vld [vmem:[#allocation3 + $0x2e8] sm:$0xff] }
 0x100   :  { %v1057_v38 = vrot.slane %v1056_v40, 1  ;;  %v1098_v50 = vadd.f32 %v1097_v15, %v1096_v3  ;;  %v974_v55 = vadd.f32 %v973_v36, %v972_v8  ;;  %v1362_v24 = vmul.f32 0.0625, %v1245_v23  ;;  %v3606_v3 = vld [vmem:[#allocation3 + $0x1b0] sm:$0xff]  ;;  %v3611_v8 = vld [vmem:[#allocation3 + $0x1c8] sm:$0xff]  ;;  %v3619_v36 = vld [vmem:[#allocation3 + $0x1f8] sm:$0xff]  ;;  %4302 = vst [vmem:[#allocation31_spill] sm:$0xff] %v3644_v54 }
 0x101   :  { %v1016_v21 = vadd.f32 %v1015_v51, %v1014_v9  ;;  %v277_v26 = vunpack.c.h.bf16 %v3557_v41  ;;  %v283_v53 = vunpack.c.h.bf16 %v3561_v13  ;;  %v289_v61 = vunpack.c.h.bf16 %v3563_v57  ;;  %v3613_v9 = vld [vmem:[#allocation3 + $0x1e0] sm:$0xff]  ;;  %v3621_v51 = vld [vmem:[#allocation3 + $0x210] sm:$0xff] }
 0x102   :  { %v1058_v35 = vadd.f32 %v1057_v38, %v1056_v40  ;;  %v1099_v56 = vrot.slane %v1098_v50, 1  ;;  %v1284_v14 = vsel %vm1224_vm3, %v974_v55, %v1283_v5  ;;  %v295_v0 = vunpack.c.h.bf16 %v3566_v48  ;;  %v2745_v19 = vld [vmem:[#allocation8 + $0x210] ss:$8 sps:$4 sm:$0xff]   ;;  %v3626_v55 = vld [vmem:[#allocation3 + $0x228] sm:$0xff] }
 0x103   :  { %v1285_v34 = vsel %vm1226_vm4, %v1016_v21, %v1284_v14  ;;  %v301_v43 = vunpack.c.h.bf16 %v3568_v25  ;;  %v307_v52 = vunpack.c.h.bf16 %v3570_v29  ;;  %v313_v40 = vunpack.c.h.bf16 %v3574_v33  ;;  %v3628_v21 = vld [vmem:[#allocation3 + $0x240] sm:$0xff]  ;;  %v2753_v14 = vld [vmem:[#allocation8 + $0x224] ss:$8 sps:$4 sm:$0xff]  }
 0x104   :  { %v1100_v6 = vadd.f32 %v1099_v56, %v1098_v50  ;;  %v1286_v10 = vsel %vm1228_vm5, %v1058_v35, %v1285_v34  ;;  %v319_v28 = vunpack.c.h.bf16 %v3576_v7  ;;  %v325_v38 = vunpack.c.h.bf16 %v3582_v39  ;;  %v3636_v34 = vld [vmem:[#allocation3 + $0x270] sm:$0xff]  ;;  %v3642_v35 = vld [vmem:[#allocation3 + $0x288] sm:$0xff]  ;;  %v2757_v50 = vld [vmem:[#allocation8 + $0x230] ss:$8 sps:$4 sm:$0xff]  }
 0x105   :  { %v331_v23 = vunpack.c.h.bf16 %v3584_v11  ;;  %v337_v56 = vunpack.c.h.bf16 %v3589_v47  ;;  %4300 = vst [vmem:[#allocation29_spill] sm:$0xff] %v3636_v34  ;;  %4301 = vst [vmem:[#allocation30_spill] sm:$0xff] %v3642_v35  ;;  %v457_v31 = vadd.f32 %v265_v30, %v259_v12  ;;  %v499_v42 = vadd.f32 %v277_v26, %v271_v27 }
 0x106   :  { %v1287_v62 = vsel %vm1230_vm6, %v1100_v6, %v1286_v10  ;;  %v3634_v6 = vld [vmem:[#allocation3 + $0x258] sm:$0xff]  ;;  %v343_v10 = vunpack.c.h.bf16 %v3591_v16  ;;  %v541_v22 = vadd.f32 %v289_v61, %v283_v53  ;;  %v583_v1 = vadd.f32 %v301_v43, %v295_v0  ;;  %v2763_v61 = vld [vmem:[#allocation8 + $0x240] ss:$8 sps:$4 sm:$0xff]  }
 0x107   :  { %v1368_v63 = vmul.f32 0.0625, %v1287_v62  ;;  %4299 = vst [vmem:[#allocation28_spill] sm:$0xff] %v3634_v6  ;;  %v3652_v62 = vld [vmem:[#allocation3 + $0x2d0] sm:$0xff]  ;;  %v625_v12 = vadd.f32 %v313_v40, %v307_v52  ;;  %v667_v30 = vadd.f32 %v325_v38, %v319_v28  ;;  %v458_v27 = vrot.slane %v457_v31, 4  ;;  %v2771_v52 = vld [vmem:[#allocation8 + $0x254] ss:$8 sps:$4 sm:$0xff]  }
 0x108   :  { %4304 = vst [vmem:[#allocation33_spill] sm:$0xff] %v3652_v62  ;;  %v500_v26 = vrot.slane %v499_v42, 4  ;;  %v709_v53 = vadd.f32 %v337_v56, %v331_v23  ;;  %v542_v0 = vrot.slane %v541_v22, 4  ;;  %v584_v43 = vrot.slane %v583_v1, 4 }
 0x109   :  { %v1374_v5 = vpack.c.bf16 %v1368_v63, %v1362_v24  ;;  %v349_v63 = vunpack.c.h.bf16 %v3597_v44  ;;  %v459_v40 = vadd.f32 %v458_v27, %v457_v31  ;;  %v2769_v27 = vld [vmem:[#allocation8 + $0x250] ss:$8 sps:$4 sm:$0xff]  }
 0x10a   :  { %v501_v24 = vadd.f32 %v500_v26, %v499_v42  ;;  %v585_v28 = vadd.f32 %v584_v43, %v583_v1 }
 0x10b   :  { %2042 = vmatmul.mubr.bf16.vlgmr.msra.gmra.mrb[0].mxu0 %v1374_v5  ;;  %v460_v15 = vrot.slane %v459_v40, 2 }
 0x10c   :  { %2053 = vmatpush1.bf16.msra.mxu0 %v2739_v59  ;;  %v502_v5 = vrot.slane %v501_v24, 2 }
 0x10d   :  { %2054 = vmatprep.subr.bf16.mxu0 %v2747_v2  ;;  %v626_v2 = vrot.slane %v625_v12, 4  ;;  %v461_v47 = vadd.f32 %v460_v15, %v459_v40 }
 0x10e   :  { %v503_v11 = vadd.f32 %v502_v5, %v501_v24 }
 0x10f   :  { %v627_v38 = vadd.f32 %v626_v2, %v625_v12 }
 0x110   :  { %2055 = vmatpush1.bf16.msra.mxu0 %v2745_v19  ;;  %v710_v19 = vrot.slane %v709_v53, 4  ;;  %v504_v12 = vrot.slane %v503_v11, 1 }
 0x111   :  { %2056 = vmatprep.subr.bf16.mxu0 %v2753_v14  ;;  %v668_v14 = vrot.slane %v667_v30, 4  ;;  %v628_v44 = vrot.slane %v627_v38, 2 }
 0x112   :  { %v711_v23 = vadd.f32 %v710_v19, %v709_v53  ;;  %v3712_v24 = vadd.f32 %v504_v12, %v503_v11  ;;  %v4305_v11 = vunpack.c.h.bf16 %v3599_v60 }
 0x113   :  { %v669_v32 = vadd.f32 %v668_v14, %v667_v30  ;;  %v629_v1 = vadd.f32 %v628_v44, %v627_v38  ;;  %v462_v14 = vrot.slane %v461_v47, 1  ;;  %v4307_v38 = vunpack.c.h.bf16 %v3606_v3 }
 0x114   :  { %2057 = vmatpush1.bf16.msra.mxu0 %v2751_v58  ;;  %v751_v58 = vadd.f32 %v349_v63, %v343_v10  ;;  %v586_v63 = vrot.slane %v585_v28, 2  ;;  %v712_v31 = vrot.slane %v711_v23, 2 }
 0x115   :  { %2058 = vmatprep.subr.bf16.mxu0 %v2759_v46  ;;  %v543_v46 = vadd.f32 %v542_v0, %v541_v22  ;;  %v670_v16 = vrot.slane %v669_v32, 2  ;;  %v630_v53 = vrot.slane %v629_v1, 1  ;;  %v3710_v15 = vadd.f32 %v462_v14, %v461_v47  ;;  %v2775_v0 = vld [vmem:[#allocation8 + $0x260] ss:$8 sps:$4 sm:$0xff]  }
 0x116   :  { %v752_v59 = vrot.slane %v751_v58, 4  ;;  %v587_v22 = vadd.f32 %v586_v63, %v585_v28  ;;  %v713_v19 = vadd.f32 %v712_v31, %v711_v23  ;;  %v4308_v23 = vunpack.c.h.bf16 %v3611_v8 }
 0x117   :  { %v544_v10 = vrot.slane %v543_v46, 2  ;;  %v671_v2 = vadd.f32 %v670_v16, %v669_v32  ;;  %v3718_v16 = vadd.f32 %v630_v53, %v629_v1  ;;  %v4310_v63 = vunpack.c.h.bf16 %v3619_v36 }
 0x118   :  { %2059 = vmatpush1.bf16.msra.mxu0 %v2757_v50  ;;  %v753_v56 = vadd.f32 %v752_v59, %v751_v58  ;;  %v588_v26 = vrot.slane %v587_v22, 1  ;;  %v714_v5 = vrot.slane %v713_v19, 1  ;;  %v4314_v1 = vunpack.c.h.bf16 %v3634_v6 }
 0x119   :  { %2060 = vmatprep.subr.bf16.mxu0 %v2765_v4  ;;  %v545_v50 = vadd.f32 %v544_v10, %v543_v46  ;;  %v2777_v4 = vld [vmem:[#allocation8 + $0x264] ss:$8 sps:$4 sm:$0xff]   ;;  %v672_v58 = vrot.slane %v671_v2, 1  ;;  %v4306_v46 = vunpack.c.h.bf16 %v3604_v18  ;;  %v4309_v10 = vunpack.c.h.bf16 %v3613_v9 }
 0x11a   :  { %v754_v42 = vrot.slane %v753_v56, 2  ;;  %v3716_v32 = vadd.f32 %v588_v26, %v587_v22  ;;  %v3722_v40 = vadd.f32 %v714_v5, %v713_v19  ;;  %v4313_v22 = vunpack.c.h.bf16 %v3628_v21 }
 0x11b   :  { %v546_v30 = vrot.slane %v545_v50, 1  ;;  %v3720_v43 = vadd.f32 %v672_v58, %v671_v2  ;;  %v793_v28 = vadd.f32 %v4306_v46, %v4305_v11  ;;  %v877_v31 = vadd.f32 %v4310_v63, %v4309_v10  ;;  %v2781_v11 = vld [vmem:[#allocation8 + $0x270] ss:$8 sps:$4 sm:$0xff]   ;;  %v2789_v63 = vld [vmem:[#allocation8 + $0x284] ss:$8 sps:$4 sm:$0xff]  }
 0x11c   :  { %2061 = vmatpush1.bf16.msra.mxu0 %v2763_v61  ;;  %v755_v59 = vadd.f32 %v754_v42, %v753_v56  ;;  %v835_v56 = vadd.f32 %v4308_v23, %v4307_v38  ;;  %v4311_v42 = vunpack.c.h.bf16 %v3621_v51  ;;  %v961_v2 = vadd.f32 %v4314_v1, %v4313_v22 }
 0x11d   :  { %2062 = vmatprep.subr.bf16.mxu0 %v2771_v52  ;;  %v3714_v44 = vadd.f32 %v546_v30, %v545_v50  ;;  %v2783_v52 = vld [vmem:[#allocation8 + $0x274] ss:$8 sps:$4 sm:$0xff]   ;;  %v4316_v14 = vunpack.c.h.bf16 %v3642_v35  ;;  %v794_v19 = vrot.slane %v793_v28, 4  ;;  %v4317_v30 = vunpack.c.h.bf16 %v3644_v54 }
 0x11e   :  { %v756_v61 = vrot.slane %v755_v59, 1  ;;  %v4318_v26 = vunpack.c.h.bf16 %v3650_v37  ;;  %v4319_v58 = vunpack.c.h.bf16 %v3652_v62  ;;  %v4320_v5 = vunpack.c.h.bf16 %v3658_v17 }
 0x11f   :  { %v878_v46 = vrot.slane %v877_v31, 4  ;;  %v962_v23 = vrot.slane %v961_v2, 4 }
 0x120   :  { %2063 = vmatpush1.bf16.msra.mxu0 %v2769_v27  ;;  %v3724_v47 = vadd.f32 %v756_v61, %v755_v59  ;;  %v4312_v27 = vunpack.c.h.bf16 %v3626_v55  ;;  %v836_v59 = vrot.slane %v835_v56, 4  ;;  %v1045_v53 = vadd.f32 %v4318_v26, %v4317_v30 }
 0x121   :  { %2064 = vmatprep.subr.bf16.mxu0 %v2777_v4  ;;  %v4315_v4 = vunpack.c.h.bf16 %v3636_v34  ;;  %v1087_v61 = vadd.f32 %v4320_v5, %v4319_v58  ;;  %v963_v30 = vadd.f32 %v962_v23, %v961_v2 }
 0x122   :  { %v919_v50 = vadd.f32 %v4312_v27, %v4311_v42  ;;  %v795_v42 = vadd.f32 %v794_v19, %v793_v28  ;;  %v837_v27 = vadd.f32 %v836_v59, %v835_v56  ;;  %v1046_v22 = vrot.slane %v1045_v53, 4 }
 0x123   :  { %v1003_v12 = vadd.f32 %v4316_v14, %v4315_v4  ;;  %v1088_v1 = vrot.slane %v1087_v61, 4  ;;  %v879_v4 = vadd.f32 %v878_v46, %v877_v31  ;;  %v964_v34 = vrot.slane %v963_v30, 2  ;;  %v2793_v46 = vld [vmem:[#allocation8 + $0x290] ss:$8 sps:$4 sm:$0xff]  }
 0x124   :  { %2065 = vmatpush1.bf16.msra.mxu0 %v2775_v0  ;;  %v920_v38 = vrot.slane %v919_v50, 4  ;;  %v796_v62 = vrot.slane %v795_v42, 2  ;;  %v838_v37 = vrot.slane %v837_v27, 2  ;;  %v1047_v54 = vadd.f32 %v1046_v22, %v1045_v53  ;;  %v2787_v0 = vld [vmem:[#allocation8 + $0x280] ss:$8 sps:$4 sm:$0xff]  }
 0x125   :  { %v1004_v10 = vrot.slane %v1003_v12, 4  ;;  %2066 = vmatprep.subr.bf16.mxu0 %v2783_v52  ;;  %v1089_v58 = vadd.f32 %v1088_v1, %v1087_v61  ;;  %v880_v5 = vrot.slane %v879_v4, 2  ;;  %v2795_v52 = vld [vmem:[#allocation8 + $0x294] ss:$8 sps:$4 sm:$0xff]   ;;  %v965_v2 = vadd.f32 %v964_v34, %v963_v30 }
 0x126   :  { %v921_v14 = vadd.f32 %v920_v38, %v919_v50  ;;  %v797_v28 = vadd.f32 %v796_v62, %v795_v42  ;;  %v839_v56 = vadd.f32 %v838_v37, %v837_v27  ;;  %v1048_v19 = vrot.slane %v1047_v54, 2  ;;  %v2801_v62 = vld [vmem:[#allocation8 + $0x2a4] ss:$8 sps:$4 sm:$0xff]  }
 0x127   :  { %v1005_v26 = vadd.f32 %v1004_v10, %v1003_v12  ;;  %v1090_v59 = vrot.slane %v1089_v58, 2  ;;  %v881_v31 = vadd.f32 %v880_v5, %v879_v4  ;;  %v966_v22 = vrot.slane %v965_v2, 1 }
 0x128   :  { %2067 = vmatpush1.bf16.msra.mxu0 %v2781_v11  ;;  %v922_v35 = vrot.slane %v921_v14, 2  ;;  %v798_v38 = vrot.slane %v797_v28, 1  ;;  %v840_v53 = vrot.slane %v839_v56, 1  ;;  %v1049_v61 = vadd.f32 %v1048_v19, %v1047_v54 }
 0x129   :  { %v1006_v6 = vrot.slane %v1005_v26, 2  ;;  %2068 = vmatprep.subr.bf16.mxu0 %v2789_v63  ;;  %v1091_v11 = vadd.f32 %v1090_v59, %v1089_v58  ;;  %v882_v23 = vrot.slane %v881_v31, 1  ;;  %v2829_v63 = vld [vmem:[#allocation11 + $0x40] sm:$0xff]   ;;  %v4323_v59 = vunpack.c.l.bf16 %v3555_v20 }
 0x12a   :  { %v923_v50 = vadd.f32 %v922_v35, %v921_v14  ;;  %v799_v37 = vadd.f32 %v798_v38, %v797_v28  ;;  %v841_v42 = vadd.f32 %v840_v53, %v839_v56  ;;  %v1050_v27 = vrot.slane %v1049_v61, 1  ;;  %2614 = vmatprep.subr.bf16.mxu1 %v2829_v63 }
 0x12b   :  { %v1007_v12 = vadd.f32 %v1006_v6, %v1005_v26  ;;  %v1092_v4 = vrot.slane %v1091_v11, 1  ;;  %v883_v35 = vadd.f32 %v882_v23, %v881_v31  ;;  %v967_v6 = vadd.f32 %v966_v22, %v965_v2  ;;  %v2805_v23 = vld [vmem:[#allocation8 + $0x2b0] ss:$8 sps:$4 sm:$0xff]   ;;  %v2813_v22 = vld [vmem:[#allocation8 + $0x2c4] ss:$8 sps:$4 sm:$0xff]  }
 0x12c   :  { %2069 = vmatpush1.bf16.msra.mxu0 %v2787_v0  ;;  %v924_v10 = vrot.slane %v923_v50, 1  ;;  %v1051_v30 = vadd.f32 %v1050_v27, %v1049_v61  ;;  %v1232_v26 = vsel %vm1218_vm0, %v3712_v24, %v3710_v15  ;;  %v1274_v58 = vsel %vm1218_vm0, %v841_v42, %v799_v37  ;;  %v2799_v0 = vld [vmem:[#allocation8 + $0x2a0] ss:$8 sps:$4 sm:$0xff]   ;;  %v2807_v15 = vld [vmem:[#allocation8 + $0x2b4] ss:$8 sps:$4 sm:$0xff]  }
 0x12d   :  { %v1008_v1 = vrot.slane %v1007_v12, 1  ;;  %2070 = vmatprep.subr.bf16.mxu0 %v2795_v52  ;;  %v1093_v54 = vadd.f32 %v1092_v4, %v1091_v11  ;;  %v1233_v5 = vsel %vm1220_vm1, %v3714_v44, %v1232_v26  ;;  %v1275_v52 = vsel %vm1220_vm1, %v883_v35, %v1274_v58 }
 0x12e   :  { %v925_v34 = vadd.f32 %v924_v10, %v923_v50  ;;  %v4321_v28 = vunpack.c.l.bf16 %v3545_v45  ;;  %v4322_v56 = vunpack.c.l.bf16 %v3550_v49  ;;  %v4324_v31 = vunpack.c.l.bf16 %v3557_v41 }
 0x12f   :  { %v1009_v14 = vadd.f32 %v1008_v1, %v1007_v12  ;;  %v1234_v24 = vsel %vm1222_vm2, %v3716_v32, %v1233_v5  ;;  %v4325_v44 = vunpack.c.l.bf16 %v3561_v13  ;;  %v4326_v12 = vunpack.c.l.bf16 %v3563_v57 }
 0x130   :  { %2071 = vmatpush1.bf16.msra.mxu0 %v2793_v46  ;;  %v450_v19 = vadd.f32 %v4322_v56, %v4321_v28  ;;  %v492_v50 = vadd.f32 %v4324_v31, %v4323_v59  ;;  %v1276_v2 = vsel %vm1222_vm2, %v925_v34, %v1275_v52  ;;  %v4327_v49 = vunpack.c.l.bf16 %v3566_v48  ;;  %v4333_v52 = vld [vmem:[#allocation24_spill] sm:$0xff]  ;;  %v4335_v56 = vld [vmem:[#allocation25_spill] sm:$0xff] }
 0x131   :  { %2072 = vmatprep.subr.bf16.mxu0 %v2801_v62  ;;  %v534_v45 = vadd.f32 %v4326_v12, %v4325_v44  ;;  %v4328_v46 = vunpack.c.l.bf16 %v3568_v25  ;;  %v1235_v41 = vsel %vm1224_vm3, %v3718_v16, %v1234_v24  ;;  %v1277_v38 = vsel %vm1224_vm3, %v967_v6, %v1276_v2  ;;  %v4337_v2 = vld [vmem:[#allocation26_spill] sm:$0xff]  ;;  %v4339_v12 = vld [vmem:[#allocation27_spill] sm:$0xff] }
 0x132   :  { %v451_v53 = vrot.slane %v450_v19, 4  ;;  %v493_v61 = vrot.slane %v492_v50, 4  ;;  %v1236_v32 = vsel %vm1226_vm4, %v3720_v43, %v1235_v41  ;;  %v1278_v13 = vsel %vm1226_vm4, %v1009_v14, %v1277_v38 }
 0x133   :  { %v576_v20 = vadd.f32 %v4328_v46, %v4327_v49  ;;  %v535_v11 = vrot.slane %v534_v45, 4  ;;  %v1237_v48 = vsel %vm1228_vm5, %v3722_v40, %v1236_v32  ;;  %v1279_v25 = vsel %vm1228_vm5, %v1051_v30, %v1278_v13 }
 0x134   :  { %2073 = vmatpush1.bf16.msra.mxu0 %v2799_v0  ;;  %v452_v10 = vadd.f32 %v451_v53, %v450_v19  ;;  %v494_v16 = vadd.f32 %v493_v61, %v492_v50  ;;  %v1238_v1 = vsel %vm1230_vm6, %v3724_v47, %v1237_v48  ;;  %v1280_v43 = vsel %vm1230_vm6, %v1093_v54, %v1279_v25  ;;  %v2811_v54 = vld [vmem:[#allocation8 + $0x2c0] ss:$8 sps:$4 sm:$0xff]   ;;  %v2817_v53 = vld [vmem:[#allocation8 + $0x2d0] ss:$8 sps:$4 sm:$0xff]  }
 0x135   :  { %v577_v57 = vrot.slane %v576_v20, 4  ;;  %2074 = vmatprep.subr.bf16.mxu0 %v2807_v15  ;;  %v536_v63 = vadd.f32 %v535_v11, %v534_v45  ;;  %v1361_v37 = vmul.f32 0.0625, %v1238_v1  ;;  %v1367_v42 = vmul.f32 0.0625, %v1280_v43 }
 0x136   :  { %v453_v27 = vrot.slane %v452_v10, 2  ;;  %v495_v4 = vrot.slane %v494_v16, 2  ;;  %v4329_v40 = vunpack.c.l.bf16 %v3570_v29  ;;  %v4330_v6 = vunpack.c.l.bf16 %v3574_v33  ;;  %v2819_v29 = vld [vmem:[#allocation8 + $0x2d4] ss:$8 sps:$4 sm:$0xff]  }
 0x137   :  { %v578_v62 = vadd.f32 %v577_v57, %v576_v20  ;;  %v537_v35 = vrot.slane %v536_v63, 2  ;;  %v4331_v30 = vunpack.c.l.bf16 %v3576_v7  ;;  %v4332_v26 = vunpack.c.l.bf16 %v3582_v39  ;;  %v2825_v57 = vld [vmem:[#allocation8 + $0x2e4] ss:$8 sps:$4 sm:$0xff]  }
 0x138   :  { %v618_v14 = vadd.f32 %v4330_v6, %v4329_v40  ;;  %2075 = vmatpush1.bf16.msra.mxu0 %v2805_v23  ;;  %v1373_v58 = vpack.c.bf16 %v1367_v42, %v1361_v37  ;;  %v454_v0 = vadd.f32 %v453_v27, %v452_v10  ;;  %v496_v5 = vadd.f32 %v495_v4, %v494_v16 }
 0x139   :  { %v579_v34 = vrot.slane %v578_v62, 2  ;;  %v660_v47 = vadd.f32 %v4332_v26, %v4331_v30  ;;  %v4334_v28 = vunpack.c.l.bf16 %v4333_v52  ;;  %v4336_v19 = vunpack.c.l.bf16 %v4335_v56  ;;  %2076 = vmatprep.subr.bf16.mxu0 %v2813_v22 }
 0x13a   :  { %v538_v31 = vadd.f32 %v537_v35, %v536_v63  ;;  %v619_v50 = vrot.slane %v618_v14, 4  ;;  %1998 = vmatprep.mubr.bf16.mxu1 %v1373_v58  ;;  %v455_v7 = vrot.slane %v454_v0, 1  ;;  %v497_v39 = vrot.slane %v496_v5, 1 }
 0x13b   :  { %v702_v59 = vadd.f32 %v4336_v19, %v4334_v28  ;;  %v580_v33 = vadd.f32 %v579_v34, %v578_v62  ;;  %v661_v15 = vrot.slane %v660_v47, 4  ;;  %v4338_v44 = vunpack.c.l.bf16 %v4337_v2  ;;  %v4350_v2 = vld [vmem:[#allocation28_spill] sm:$0xff] }
 0x13c   :  { %v4340_v45 = vunpack.c.l.bf16 %v4339_v12  ;;  %v444_v46 = vunpack.c.l.bf16 %v3658_v17  ;;  %v539_v20 = vrot.slane %v538_v31, 1  ;;  %v620_v41 = vadd.f32 %v619_v50, %v618_v14  ;;  %2077 = vmatpush1.bf16.msra.mxu0 %v2811_v54 }
 0x13d   :  { %v703_v24 = vrot.slane %v702_v59, 4  ;;  %v662_v38 = vadd.f32 %v661_v15, %v660_v47  ;;  %v3813_v61 = vadd.f32 %v455_v7, %v454_v0  ;;  %v581_v32 = vrot.slane %v580_v33, 1  ;;  %2078 = vmatprep.subr.bf16.mxu0 %v2819_v29  ;;  %v2826_v15 = vld [vmem:[#allocation8 + $0x2f0] ss:$8 sps:$4 sm:$0xff]  }
 0x13e   :  { %v744_v49 = vadd.f32 %v4340_v45, %v4338_v44  ;;  %v3815_v23 = vadd.f32 %v497_v39, %v496_v5  ;;  %v3817_v48 = vadd.f32 %v539_v20, %v538_v31  ;;  %v621_v25 = vrot.slane %v620_v41, 2  ;;  %v4352_v45 = vld [vmem:[#allocation29_spill] sm:$0xff]  ;;  %v4354_v20 = vld [vmem:[#allocation30_spill] sm:$0xff] }
 0x13f   :  { %v704_v13 = vadd.f32 %v703_v24, %v702_v59  ;;  %v663_v10 = vrot.slane %v662_v38, 2  ;;  %v4341_v1 = vunpack.c.l.bf16 %v3599_v60  ;;  %v4342_v43 = vunpack.c.l.bf16 %v3604_v18  ;;  %v2823_v18 = vld [vmem:[#allocation8 + $0x2e0] ss:$8 sps:$4 sm:$0xff]  }
 0x140   :  { %v745_v11 = vrot.slane %v744_v49, 4  ;;  %v4343_v62 = vunpack.c.l.bf16 %v3606_v3  ;;  %v4344_v37 = vunpack.c.l.bf16 %v3611_v8  ;;  %v622_v27 = vadd.f32 %v621_v25, %v620_v41  ;;  %2079 = vmatpush1.bf16.msra.mxu0 %v2817_v53 }
 0x141   :  { %v705_v16 = vrot.slane %v704_v13, 2  ;;  %v786_v63 = vadd.f32 %v4342_v43, %v4341_v1  ;;  %v664_v4 = vadd.f32 %v663_v10, %v662_v38  ;;  %v4345_v35 = vunpack.c.l.bf16 %v3613_v9  ;;  %2080 = vmatprep.subr.bf16.mxu0 %v2825_v57  ;;  %v2828_v9 = vld [vmem:[#allocation8 + $0x2f4] ss:$8 sps:$4 sm:$0xff]  }
 0x142   :  { %v746_v22 = vadd.f32 %v745_v11, %v744_v49  ;;  %v828_v42 = vadd.f32 %v4344_v37, %v4343_v62  ;;  %v4346_v34 = vunpack.c.l.bf16 %v3619_v36  ;;  %v4347_v6 = vunpack.c.l.bf16 %v3621_v51  ;;  %v4358_v57 = vld [vmem:[#allocation32_spill] sm:$0xff]  ;;  %v4360_v37 = vld [vmem:[#allocation33_spill] sm:$0xff] }
 0x143   :  { %v4348_v14 = vunpack.c.l.bf16 %v3626_v55  ;;  %v706_v30 = vadd.f32 %v705_v16, %v704_v13  ;;  %v787_v3 = vrot.slane %v786_v63, 4  ;;  %v623_v8 = vrot.slane %v622_v27, 1  ;;  %v4356_v13 = vld [vmem:[#allocation31_spill] sm:$0xff] }
 0x144   :  { %v870_v40 = vadd.f32 %v4346_v34, %v4345_v35  ;;  %v747_v26 = vrot.slane %v746_v22, 2  ;;  %v829_v47 = vrot.slane %v828_v42, 4  ;;  %v665_v54 = vrot.slane %v664_v4, 1  ;;  %2081 = vmatpush1.bf16.msra.mxu0 %v2823_v18 }
 0x145   :  { %v912_v60 = vadd.f32 %v4348_v14, %v4347_v6  ;;  %v707_v5 = vrot.slane %v706_v30, 1  ;;  %v788_v52 = vadd.f32 %v787_v3, %v786_v63  ;;  %v582_v51 = vadd.f32 %v581_v32, %v580_v33  ;;  %2082 = vmatprep.subr.bf16.mxu0 %v2828_v9 }
 0x146   :  { %v871_v58 = vrot.slane %v870_v40, 4  ;;  %v748_v36 = vadd.f32 %v747_v26, %v746_v22  ;;  %v830_v28 = vadd.f32 %v829_v47, %v828_v42  ;;  %v624_v56 = vadd.f32 %v623_v8, %v622_v27 }
 0x147   :  { %v913_v0 = vrot.slane %v912_v60, 4  ;;  %v666_v59 = vadd.f32 %v665_v54, %v664_v4  ;;  %v708_v29 = vadd.f32 %v707_v5, %v706_v30  ;;  %v789_v31 = vrot.slane %v788_v52, 2 }
 0x148   :  { %v872_v55 = vadd.f32 %v871_v58, %v870_v40  ;;  %v831_v50 = vrot.slane %v830_v28, 2  ;;  %v4349_v24 = vunpack.c.l.bf16 %v3628_v21  ;;  %v4351_v44 = vunpack.c.l.bf16 %v4350_v2  ;;  %2083 = vmatpush1.bf16.msra.mxu0 %v2826_v15 }
 0x149   :  { %v914_v19 = vadd.f32 %v913_v0, %v912_v60  ;;  %v4353_v49 = vunpack.c.l.bf16 %v4352_v45  ;;  %v4355_v33 = vunpack.c.l.bf16 %v4354_v20  ;;  %v749_v38 = vrot.slane %v748_v36, 1  ;;  %v3871_v20 = vld [vmem:[#allocation3 + $0x58] sm:$0xff] }
 0x14a   :  { %v873_v7 = vrot.slane %v872_v55, 2  ;;  %v954_v12 = vadd.f32 %v4351_v44, %v4349_v24  ;;  %v790_v53 = vadd.f32 %v789_v31, %v788_v52  ;;  %v832_v32 = vadd.f32 %v831_v50, %v830_v28  ;;  %v3859_v31 = vld [vmem:[#allocation3 + $0x10] sm:$0xff] }
 0x14b   :  { %v915_v39 = vrot.slane %v914_v19, 2  ;;  %v996_v41 = vadd.f32 %v4355_v33, %v4353_v49  ;;  %v4357_v11 = vunpack.c.l.bf16 %v4356_v13  ;;  %v4359_v25 = vunpack.c.l.bf16 %v4358_v57  ;;  %v3873_v33 = vld [vmem:[#allocation3 + $0x70] sm:$0xff]  ;;  %v3882_v57 = vld [vmem:[#allocation3 + $0xa0] sm:$0xff] }
 0x14c   :  { %v874_v16 = vadd.f32 %v873_v7, %v872_v55  ;;  %v955_v21 = vrot.slane %v954_v12, 4  ;;  %v791_v43 = vrot.slane %v790_v53, 1  ;;  %v833_v63 = vrot.slane %v832_v32, 1 }
 0x14d   :  { %v1038_v10 = vadd.f32 %v4359_v25, %v4357_v11  ;;  %v916_v22 = vadd.f32 %v915_v39, %v914_v19  ;;  %v997_v1 = vrot.slane %v996_v41, 4  ;;  %v4361_v42 = vunpack.c.l.bf16 %v4360_v37  ;;  %v3884_v25 = vld [vmem:[#allocation3 + $0xb8] sm:$0xff] }
 0x14e   :  { %v875_v4 = vrot.slane %v874_v16, 1  ;;  %v956_v34 = vadd.f32 %v955_v21, %v954_v12  ;;  %v792_v6 = vadd.f32 %v791_v43, %v790_v53  ;;  %v834_v14 = vadd.f32 %v833_v63, %v832_v32  ;;  %v3867_v12 = vld [vmem:[#allocation3 + $0x40] sm:$0xff]  ;;  %v3877_v53 = vld [vmem:[#allocation3 + $0x88] sm:$0xff]  ;;  %v3889_v21 = vld [vmem:[#allocation3 + $0xd0] sm:$0xff] }
 0x14f   :  { %v1039_v62 = vrot.slane %v1038_v10, 4  ;;  %v1080_v27 = vadd.f32 %v444_v46, %v4361_v42  ;;  %v917_v35 = vrot.slane %v916_v22, 1  ;;  %v998_v40 = vadd.f32 %v997_v1, %v996_v41  ;;  %v3891_v1 = vld [vmem:[#allocation3 + $0xe8] sm:$0xff]  ;;  %v3897_v42 = vld [vmem:[#allocation3 + $0x100] sm:$0xff] }
 0x150   :  { %v876_v30 = vadd.f32 %v875_v4, %v874_v16  ;;  %v957_v3 = vrot.slane %v956_v34, 2  ;;  %v1219_v17 = vsel %vm1218_vm0, %v3815_v23, %v3813_v61  ;;  %v1267_v46 = vsel %vm1218_vm0, %v834_v14, %v792_v6  ;;  %v3904_v6 = vld [vmem:[#allocation3 + $0x130] sm:$0xff]  ;;  %v3974_v4 = vld [vmem:[#allocation3 + $0x2e0] sm:$0xff] }
 0x151   :  { %v1040_v60 = vadd.f32 %v1039_v62, %v1038_v10  ;;  %v1081_v18 = vrot.slane %v1080_v27, 4  ;;  %v918_v26 = vadd.f32 %v917_v35, %v916_v22  ;;  %v999_v47 = vrot.slane %v998_v40, 2  ;;  %4362 = vst [vmem:[#allocation34_spill] sm:$0xff] %v3904_v6  ;;  %v3976_v62 = vld [vmem:[#allocation3 + $0x2f8] sm:$0xff] }
 0x152   :  { %v958_v58 = vadd.f32 %v957_v3, %v956_v34  ;;  %v1221_v9 = vsel %vm1220_vm1, %v3817_v48, %v1219_v17  ;;  %v1268_v5 = vsel %vm1220_vm1, %v876_v30, %v1267_v46  ;;  %v750_v52 = vadd.f32 %v749_v38, %v748_v36  ;;  %v3864_v48 = vld [vmem:[#allocation3 + $0x28] sm:$0xff] }
 0x153   :  { %v1041_v8 = vrot.slane %v1040_v60, 2  ;;  %v1082_v54 = vadd.f32 %v1081_v18, %v1080_v27  ;;  %v1000_v0 = vadd.f32 %v999_v47, %v998_v40  ;;  %v1223_v19 = vsel %vm1222_vm2, %v582_v51, %v1221_v9  ;;  %v3902_v40 = vld [vmem:[#allocation3 + $0x118] sm:$0xff]  ;;  %v3909_v30 = vld [vmem:[#allocation3 + $0x148] sm:$0xff]  ;;  %v3966_v47 = vld [vmem:[#allocation3 + $0x2b0] sm:$0xff] }
 0x154   :  { %v959_v50 = vrot.slane %v958_v58, 1  ;;  %v1225_v61 = vsel %vm1224_vm3, %v624_v56, %v1223_v19  ;;  %v1269_v24 = vsel %vm1222_vm2, %v918_v26, %v1268_v5  ;;  %v269_v32 = vunpack.c.h.bf16 %v3864_v48  ;;  %4363 = vst [vmem:[#allocation24_spill] sm:$0xff] %v3909_v30  ;;  %v3911_v26 = vld [vmem:[#allocation3 + $0x160] sm:$0xff]  ;;  %v2830_v17 = vld [vmem:[#allocation11] sm:$0xff]   ;;  %4372 = vst [vmem:[#allocation33_spill] sm:$0xff] %v3966_v47 }
 0x155   :  { %v1042_v28 = vadd.f32 %v1041_v8, %v1040_v60  ;;  %v1083_v55 = vrot.slane %v1082_v54, 2  ;;  %v1001_v15 = vrot.slane %v1000_v0, 1  ;;  %v1227_v39 = vsel %vm1226_vm4, %v666_v59, %v1225_v61  ;;  %4364 = vst [vmem:[#allocation25_spill] sm:$0xff] %v3911_v26  ;;  %v3926_v19 = vld [vmem:[#allocation3 + $0x1c0] sm:$0xff]  ;;  %v3956_v61 = vld [vmem:[#allocation3 + $0x268] sm:$0xff] }
 0x156   :  { %v960_v2 = vadd.f32 %v959_v50, %v958_v58  ;;  %v1229_v44 = vsel %vm1228_vm5, %v708_v29, %v1227_v39  ;;  %v263_v59 = vunpack.c.h.bf16 %v3859_v31  ;;  %v275_v16 = vunpack.c.h.bf16 %v3867_v12  ;;  %v3917_v58 = vld [vmem:[#allocation3 + $0x178] sm:$0xff]  ;;  %v3934_v39 = vld [vmem:[#allocation3 + $0x1f0] sm:$0xff]  ;;  %4369 = vst [vmem:[#allocation30_spill] sm:$0xff] %v3956_v61 }
 0x157   :  { %v1043_v23 = vrot.slane %v1042_v28, 1  ;;  %v1084_v7 = vadd.f32 %v1083_v55, %v1082_v54  ;;  %v1002_v36 = vadd.f32 %v1001_v15, %v1000_v0  ;;  %v1231_v56 = vsel %vm1230_vm6, %v750_v52, %v1229_v44  ;;  %4365 = vst [vmem:[#allocation26_spill] sm:$0xff] %v3917_v58  ;;  %v3919_v0 = vld [vmem:[#allocation3 + $0x190] sm:$0xff]  ;;  %v3924_v55 = vld [vmem:[#allocation3 + $0x1a8] sm:$0xff]  ;;  %v3964_v54 = vld [vmem:[#allocation3 + $0x298] sm:$0xff] }
 0x158   :  { %v1270_v41 = vsel %vm1224_vm3, %v960_v2, %v1269_v24  ;;  %v1360_v38 = vmul.f32 0.0625, %v1231_v56  ;;  %v281_v63 = vunpack.c.h.bf16 %v3871_v20  ;;  %v287_v27 = vunpack.c.h.bf16 %v3873_v33  ;;  %v2833_v24 = vld [vmem:[#allocation11 + $0x50] sm:$0xff]   ;;  %4371 = vst [vmem:[#allocation32_spill] sm:$0xff] %v3964_v54 }
 0x159   :  { %v1044_v45 = vadd.f32 %v1043_v23, %v1042_v28  ;;  %v1085_v49 = vrot.slane %v1084_v7, 1  ;;  %v1271_v11 = vsel %vm1226_vm4, %v1002_v36, %v1270_v41  ;;  %v293_v35 = vunpack.c.h.bf16 %v3877_v53  ;;  %v2831_v28 = vld [vmem:[#allocation11 + $0x48] sm:$0xff]   ;;  %v3968_v36 = vld [vmem:[#allocation3 + $0x2c8] sm:$0xff] }
 0x15a   :  { %v299_v60 = vunpack.c.h.bf16 %v3882_v57  ;;  %v305_v3 = vunpack.c.h.bf16 %v3884_v25  ;;  %v311_v8 = vunpack.c.h.bf16 %v3889_v21  ;;  %v317_v9 = vunpack.c.h.bf16 %v3891_v1  ;;  %4373 = vst [vmem:[#allocation35_spill] sm:$0xff] %v3968_v36 }
 0x15b   :  { %v1086_v13 = vadd.f32 %v1085_v49, %v1084_v7  ;;  %v1272_v22 = vsel %vm1228_vm5, %v1044_v45, %v1271_v11  ;;  %v323_v52 = vunpack.c.h.bf16 %v3897_v42  ;;  %v329_v15 = vunpack.c.h.bf16 %v3902_v40  ;;  %v3932_v7 = vld [vmem:[#allocation3 + $0x1d8] sm:$0xff]  ;;  %v3940_v45 = vld [vmem:[#allocation3 + $0x208] sm:$0xff]  ;;  %v3942_v49 = vld [vmem:[#allocation3 + $0x220] sm:$0xff] }
 0x15c   :  { %v335_v23 = vunpack.c.h.bf16 %v3904_v6  ;;  %v341_v2 = vunpack.c.h.bf16 %v3909_v30  ;;  %v347_v44 = vunpack.c.h.bf16 %v3911_v26  ;;  %4366 = vst [vmem:[#allocation27_spill] sm:$0xff] %v3942_v49  ;;  %v353_v41 = vunpack.c.h.bf16 %v3917_v58  ;;  %v2832_v11 = vld [vmem:[#allocation11 + $0x8] sm:$0xff]  }
 0x15d   :  { %v1273_v37 = vsel %vm1230_vm6, %v1086_v13, %v1272_v22  ;;  %v3948_v22 = vld [vmem:[#allocation3 + $0x238] sm:$0xff]  ;;  %v527_v10 = vadd.f32 %v281_v63, %v275_v16  ;;  %v611_v5 = vadd.f32 %v305_v3, %v299_v60 }
 0x15e   :  { %v1366_v34 = vmul.f32 0.0625, %v1273_v37  ;;  %4367 = vst [vmem:[#allocation28_spill] sm:$0xff] %v3948_v22  ;;  %v3950_v37 = vld [vmem:[#allocation3 + $0x250] sm:$0xff]  ;;  %v737_v16 = vadd.f32 %v341_v2, %v335_v23  ;;  %v779_v63 = vadd.f32 %v353_v41, %v347_v44 }
 0x15f   :  { %4368 = vst [vmem:[#allocation29_spill] sm:$0xff] %v3950_v37  ;;  %v528_v60 = vrot.slane %v527_v10, 4 }
 0x160   :  { %v1372_v46 = vpack.c.bf16 %v1366_v34, %v1360_v38  ;;  %v3958_v38 = vld [vmem:[#allocation3 + $0x280] sm:$0xff]  ;;  %v738_v29 = vrot.slane %v737_v16, 4  ;;  %v780_v43 = vrot.slane %v779_v63, 4 }
 0x161   :  { %4370 = vst [vmem:[#allocation31_spill] sm:$0xff] %v3958_v38  ;;  %v2835_v34 = vld [vmem:[#allocation11 + $0x58] sm:$0xff]  }
 0x162   :  { %1999 = vmatmul.mubr.bf16.vlgmr.msra.gmra.mrb[0].mxu1 %v1372_v46  ;;  %v739_v23 = vadd.f32 %v738_v29, %v737_v16  ;;  %v781_v2 = vadd.f32 %v780_v43, %v779_v63 }
 0x163   :  { %2615 = vmatpush3.bf16.msra.mxu1 %v2830_v17  ;;  %v2836_v17 = vld [vmem:[#allocation11 + $0x18] sm:$0xff]  }
 0x164   :  { %2616 = vmatprep.subr.bf16.mxu1 %v2831_v28  ;;  %v2834_v28 = vld [vmem:[#allocation11 + $0x10] sm:$0xff]   ;;  %v740_v26 = vrot.slane %v739_v23, 2  ;;  %v782_v30 = vrot.slane %v781_v2, 2 }
 0x167   :  { %2617 = vmatpush3.bf16.msra.mxu1 %v2832_v11  ;;  %v569_v11 = vadd.f32 %v293_v35, %v287_v27  ;;  %v2837_v27 = vld [vmem:[#allocation11 + $0x60] sm:$0xff]  }
 0x168   :  { %2618 = vmatprep.subr.bf16.mxu1 %v2833_v24  ;;  %v485_v24 = vadd.f32 %v269_v32, %v263_v59  ;;  %v653_v59 = vadd.f32 %v317_v9, %v311_v8  ;;  %v695_v32 = vadd.f32 %v329_v15, %v323_v52  ;;  %v529_v9 = vadd.f32 %v528_v60, %v527_v10  ;;  %v2838_v52 = vld [vmem:[#allocation11 + $0x20] sm:$0xff]  }
 0x169   :  { %v570_v3 = vrot.slane %v569_v11, 4 }
 0x16a   :  { %v486_v35 = vrot.slane %v485_v24, 4  ;;  %v654_v14 = vrot.slane %v653_v59, 4  ;;  %v696_v51 = vrot.slane %v695_v32, 4  ;;  %v530_v41 = vrot.slane %v529_v9, 2 }
 0x16b   :  { %2619 = vmatpush3.bf16.msra.mxu1 %v2834_v28  ;;  %v612_v28 = vrot.slane %v611_v5, 4  ;;  %v571_v18 = vadd.f32 %v570_v3, %v569_v11 }
 0x16c   :  { %2620 = vmatprep.subr.bf16.mxu1 %v2835_v34  ;;  %v487_v8 = vadd.f32 %v486_v35, %v485_v24  ;;  %v655_v15 = vadd.f32 %v654_v14, %v653_v59  ;;  %v697_v56 = vadd.f32 %v696_v51, %v695_v32  ;;  %v531_v24 = vadd.f32 %v530_v41, %v529_v9 }
 0x16d   :  { %v613_v50 = vadd.f32 %v612_v28, %v611_v5  ;;  %v572_v34 = vrot.slane %v571_v18, 2  ;;  %v741_v14 = vadd.f32 %v740_v26, %v739_v23  ;;  %v783_v51 = vadd.f32 %v782_v30, %v781_v2 }
 0x16e   :  { %v488_v44 = vrot.slane %v487_v8, 2  ;;  %v656_v13 = vrot.slane %v655_v15, 2  ;;  %v698_v58 = vrot.slane %v697_v56, 2  ;;  %v532_v43 = vrot.slane %v531_v24, 1 }
 0x16f   :  { %2621 = vmatpush3.bf16.msra.mxu1 %v2836_v17  ;;  %v614_v46 = vrot.slane %v613_v50, 2  ;;  %v573_v10 = vadd.f32 %v572_v34, %v571_v18  ;;  %v784_v35 = vrot.slane %v783_v51, 1  ;;  %v4380_v2 = vunpack.c.h.bf16 %v3942_v49 }
 0x170   :  { %2622 = vmatprep.subr.bf16.mxu1 %v2837_v27  ;;  %v489_v6 = vadd.f32 %v488_v44, %v487_v8  ;;  %v657_v5 = vadd.f32 %v656_v13, %v655_v15  ;;  %v699_v17 = vadd.f32 %v698_v58, %v697_v56  ;;  %v742_v27 = vrot.slane %v741_v14, 1 }
 0x171   :  { %v615_v11 = vadd.f32 %v614_v46, %v613_v50  ;;  %v574_v59 = vrot.slane %v573_v10, 1  ;;  %v4022_v3 = vadd.f32 %v532_v43, %v531_v24  ;;  %v4034_v58 = vadd.f32 %v784_v35, %v783_v51 }
 0x172   :  { %v490_v29 = vrot.slane %v489_v6, 1  ;;  %v658_v16 = vrot.slane %v657_v5, 1  ;;  %v700_v63 = vrot.slane %v699_v17, 1  ;;  %v4032_v30 = vadd.f32 %v742_v27, %v741_v14 }
 0x173   :  { %2623 = vmatpush3.bf16.msra.mxu1 %v2838_v52  ;;  %v616_v32 = vrot.slane %v615_v11, 1  ;;  %v4024_v28 = vadd.f32 %v574_v59, %v573_v10  ;;  %v4374_v56 = vunpack.c.h.bf16 %v3919_v0  ;;  %v4375_v13 = vunpack.c.h.bf16 %v3924_v55 }
 0x174   :  { %v4020_v60 = vadd.f32 %v490_v29, %v489_v6  ;;  %v4028_v50 = vadd.f32 %v658_v16, %v657_v5  ;;  %v4030_v26 = vadd.f32 %v700_v63, %v699_v17  ;;  %v4376_v46 = vunpack.c.h.bf16 %v3926_v19 }
 0x175   :  { %v4026_v18 = vadd.f32 %v616_v32, %v615_v11  ;;  %v821_v6 = vadd.f32 %v4375_v13, %v4374_v56  ;;  %v4377_v8 = vunpack.c.h.bf16 %v3932_v7  ;;  %v4378_v52 = vunpack.c.h.bf16 %v3934_v39 }
 0x176   :  { %v4379_v15 = vunpack.c.h.bf16 %v3940_v45  ;;  %v4381_v44 = vunpack.c.h.bf16 %v3948_v22  ;;  %v4382_v34 = vunpack.c.h.bf16 %v3950_v37  ;;  %v4383_v24 = vunpack.c.h.bf16 %v3956_v61 }
 0x177   :  { %v863_v9 = vadd.f32 %v4377_v8, %v4376_v46  ;;  %v4384_v11 = vunpack.c.h.bf16 %v3958_v38  ;;  %v4385_v5 = vunpack.c.h.bf16 %v3964_v54  ;;  %v4386_v14 = vunpack.c.h.bf16 %v3966_v47 }
 0x178   :  { %v905_v23 = vadd.f32 %v4379_v15, %v4378_v52  ;;  %v947_v41 = vadd.f32 %v4381_v44, %v4380_v2  ;;  %v989_v10 = vadd.f32 %v4383_v24, %v4382_v34  ;;  %v4387_v51 = vunpack.c.h.bf16 %v3968_v36 }
 0x179   :  { %v1031_v17 = vadd.f32 %v4385_v5, %v4384_v11  ;;  %v4388_v43 = vunpack.c.h.bf16 %v3974_v4  ;;  %v4389_v59 = vunpack.c.h.bf16 %v3976_v62  ;;  %v822_v16 = vrot.slane %v821_v6, 4 }
 0x17a   :  { %v1073_v29 = vadd.f32 %v4387_v51, %v4386_v14  ;;  %v864_v63 = vrot.slane %v863_v9, 4  ;;  %v906_v27 = vrot.slane %v905_v23, 4  ;;  %v948_v35 = vrot.slane %v947_v41, 4 }
 0x17b   :  { %v1115_v32 = vadd.f32 %v4389_v59, %v4388_v43  ;;  %v990_v56 = vrot.slane %v989_v10, 4  ;;  %v1032_v13 = vrot.slane %v1031_v17, 4  ;;  %v823_v52 = vadd.f32 %v822_v16, %v821_v6 }
 0x17c   :  { %v1074_v46 = vrot.slane %v1073_v29, 4  ;;  %v865_v15 = vadd.f32 %v864_v63, %v863_v9  ;;  %v907_v2 = vadd.f32 %v906_v27, %v905_v23  ;;  %v949_v44 = vadd.f32 %v948_v35, %v947_v41 }
 0x17d   :  { %v1116_v8 = vrot.slane %v1115_v32, 4  ;;  %v991_v34 = vadd.f32 %v990_v56, %v989_v10  ;;  %v1033_v24 = vadd.f32 %v1032_v13, %v1031_v17  ;;  %v824_v14 = vrot.slane %v823_v52, 2 }
 0x17e   :  { %v1075_v11 = vadd.f32 %v1074_v46, %v1073_v29  ;;  %v866_v51 = vrot.slane %v865_v15, 2  ;;  %v908_v36 = vrot.slane %v907_v2, 2  ;;  %v950_v43 = vrot.slane %v949_v44, 2 }
 0x17f   :  { %v1117_v5 = vadd.f32 %v1116_v8, %v1115_v32  ;;  %v992_v59 = vrot.slane %v991_v34, 2  ;;  %v1034_v47 = vrot.slane %v1033_v24, 2  ;;  %v825_v61 = vadd.f32 %v824_v14, %v823_v52 }
 0x180   :  { %v1076_v54 = vrot.slane %v1075_v11, 2  ;;  %v867_v37 = vadd.f32 %v866_v51, %v865_v15  ;;  %v909_v22 = vadd.f32 %v908_v36, %v907_v2  ;;  %v951_v49 = vadd.f32 %v950_v43, %v949_v44 }
 0x181   :  { %v1118_v38 = vrot.slane %v1117_v5, 2  ;;  %v993_v6 = vadd.f32 %v992_v59, %v991_v34  ;;  %v1035_v9 = vadd.f32 %v1034_v47, %v1033_v24  ;;  %v826_v10 = vrot.slane %v825_v61, 1 }
 0x182   :  { %v1077_v23 = vadd.f32 %v1076_v54, %v1075_v11  ;;  %v868_v17 = vrot.slane %v867_v37, 1  ;;  %v910_v29 = vrot.slane %v909_v22, 1  ;;  %v952_v32 = vrot.slane %v951_v49, 1 }
 0x183   :  { %v1119_v41 = vadd.f32 %v1118_v38, %v1117_v5  ;;  %v994_v16 = vrot.slane %v993_v6, 1  ;;  %v1036_v63 = vrot.slane %v1035_v9, 1  ;;  %v827_v56 = vadd.f32 %v826_v10, %v825_v61 }
 0x184   :  { %v1078_v27 = vrot.slane %v1077_v23, 1  ;;  %v869_v13 = vadd.f32 %v868_v17, %v867_v37  ;;  %v911_v46 = vadd.f32 %v910_v29, %v909_v22  ;;  %v953_v8 = vadd.f32 %v952_v32, %v951_v49 }
 0x185   :  { %v1120_v35 = vrot.slane %v1119_v41, 1  ;;  %v995_v52 = vadd.f32 %v994_v16, %v993_v6  ;;  %v1037_v15 = vadd.f32 %v1036_v63, %v1035_v9  ;;  %v1260_v47 = vsel %vm1218_vm0, %v4022_v3, %v4020_v60 }
 0x186   :  { %v1079_v36 = vadd.f32 %v1078_v27, %v1077_v23  ;;  %v1302_v54 = vsel %vm1218_vm0, %v869_v13, %v827_v56  ;;  %v4390_v38 = vunpack.c.l.bf16 %v3859_v31  ;;  %v4391_v44 = vunpack.c.l.bf16 %v3864_v48 }
 0x187   :  { %v1121_v2 = vadd.f32 %v1120_v35, %v1119_v41  ;;  %v4392_v61 = vunpack.c.l.bf16 %v3867_v12  ;;  %v4393_v22 = vunpack.c.l.bf16 %v3871_v20  ;;  %v1261_v37 = vsel %vm1220_vm1, %v4024_v28, %v1260_v47 }
 0x188   :  { %v478_v34 = vadd.f32 %v4391_v44, %v4390_v38  ;;  %v1303_v24 = vsel %vm1220_vm1, %v911_v46, %v1302_v54  ;;  %v4394_v11 = vunpack.c.l.bf16 %v3873_v33  ;;  %v4395_v60 = vunpack.c.l.bf16 %v3877_v53  ;;  %v4404_v54 = vld [vmem:[#allocation24_spill] sm:$0xff] }
 0x189   :  { %v520_v49 = vadd.f32 %v4393_v22, %v4392_v61  ;;  %v4396_v31 = vunpack.c.l.bf16 %v3882_v57  ;;  %v4397_v48 = vunpack.c.l.bf16 %v3884_v25  ;;  %v1262_v12 = vsel %vm1222_vm2, %v4026_v18, %v1261_v37 }
 0x18a   :  { %v562_v3 = vadd.f32 %v4395_v60, %v4394_v11  ;;  %v1304_v20 = vsel %vm1222_vm2, %v953_v8, %v1303_v24  ;;  %v479_v14 = vrot.slane %v478_v34, 4  ;;  %v1263_v28 = vsel %vm1224_vm3, %v4028_v50, %v1262_v12  ;;  %v4408_v24 = vld [vmem:[#allocation26_spill] sm:$0xff] }
 0x18b   :  { %v604_v5 = vadd.f32 %v4397_v48, %v4396_v31  ;;  %v521_v51 = vrot.slane %v520_v49, 4  ;;  %v1305_v33 = vsel %vm1224_vm3, %v995_v52, %v1304_v20  ;;  %v1264_v57 = vsel %vm1226_vm4, %v4030_v26, %v1263_v28 }
 0x18c   :  { %v563_v43 = vrot.slane %v562_v3, 4  ;;  %v1306_v25 = vsel %vm1226_vm4, %v1037_v15, %v1305_v33  ;;  %v480_v59 = vadd.f32 %v479_v14, %v478_v34  ;;  %v1265_v18 = vsel %vm1228_vm5, %v4032_v30, %v1264_v57 }
 0x18d   :  { %v605_v53 = vrot.slane %v604_v5, 4  ;;  %v522_v6 = vadd.f32 %v521_v51, %v520_v49  ;;  %v1307_v9 = vsel %vm1228_vm5, %v1079_v36, %v1306_v25  ;;  %v1266_v50 = vsel %vm1230_vm6, %v4034_v58, %v1265_v18 }
 0x18e   :  { %v564_v23 = vadd.f32 %v563_v43, %v562_v3  ;;  %v1308_v10 = vsel %vm1230_vm6, %v1121_v2, %v1307_v9  ;;  %v481_v17 = vrot.slane %v480_v59, 2  ;;  %v1365_v32 = vmul.f32 0.0625, %v1266_v50  ;;  %v4402_v2 = vld [vmem:[#allocation34_spill] sm:$0xff] }
 0x18f   :  { %v606_v41 = vadd.f32 %v605_v53, %v604_v5  ;;  %v523_v29 = vrot.slane %v522_v6, 2  ;;  %v1371_v26 = vmul.f32 0.0625, %v1308_v10  ;;  %v4398_v56 = vunpack.c.l.bf16 %v3889_v21  ;;  %v4418_v10 = vld [vmem:[#allocation28_spill] sm:$0xff] }
 0x190   :  { %v565_v16 = vrot.slane %v564_v23, 2  ;;  %v482_v27 = vadd.f32 %v481_v17, %v480_v59  ;;  %v4399_v30 = vunpack.c.l.bf16 %v3891_v1  ;;  %v4400_v46 = vunpack.c.l.bf16 %v3897_v42 }
 0x191   :  { %v607_v63 = vrot.slane %v606_v41, 2  ;;  %v524_v35 = vadd.f32 %v523_v29, %v522_v6  ;;  %v4401_v8 = vunpack.c.l.bf16 %v3902_v40  ;;  %v1377_v52 = vpack.c.bf16 %v1371_v26, %v1365_v32  ;;  %v4406_v40 = vld [vmem:[#allocation25_spill] sm:$0xff] }
 0x192   :  { %v646_v13 = vadd.f32 %v4399_v30, %v4398_v56  ;;  %v566_v15 = vadd.f32 %v565_v16, %v564_v23  ;;  %v4403_v47 = vunpack.c.l.bf16 %v4402_v2  ;;  %v4405_v38 = vunpack.c.l.bf16 %v4404_v54 }
 0x193   :  { %v688_v58 = vadd.f32 %v4401_v8, %v4400_v46  ;;  %v608_v36 = vadd.f32 %v607_v63, %v606_v41  ;;  %v483_v34 = vrot.slane %v482_v27, 1  ;;  %v525_v61 = vrot.slane %v524_v35, 1  ;;  %2084 = vmatprep.mubr.bf16.mxu0 %v1377_v52  ;;  %v4416_v41 = vld [vmem:[#allocation27_spill] sm:$0xff] }
 0x194   :  { %v730_v44 = vadd.f32 %v4405_v38, %v4403_v47  ;;  %v647_v22 = vrot.slane %v646_v13, 4  ;;  %v442_v1 = vunpack.c.l.bf16 %v3974_v4  ;;  %v448_v49 = vunpack.c.l.bf16 %v3976_v62 }
 0x195   :  { %v689_v21 = vrot.slane %v688_v58, 4  ;;  %v4407_v37 = vunpack.c.l.bf16 %v4406_v40  ;;  %v4409_v11 = vunpack.c.l.bf16 %v4408_v24  ;;  %v567_v3 = vrot.slane %v566_v15, 1  ;;  %v4424_v24 = vld [vmem:[#allocation31_spill] sm:$0xff] }
 0x196   :  { %v731_v42 = vrot.slane %v730_v44, 4  ;;  %v609_v31 = vrot.slane %v608_v36, 1  ;;  %v648_v48 = vadd.f32 %v647_v22, %v646_v13  ;;  %v4124_v12 = vadd.f32 %v483_v34, %v482_v27  ;;  %v4420_v22 = vld [vmem:[#allocation29_spill] sm:$0xff] }
 0x197   :  { %v772_v60 = vadd.f32 %v4409_v11, %v4407_v37  ;;  %v690_v5 = vadd.f32 %v689_v21, %v688_v58  ;;  %v526_v20 = vadd.f32 %v525_v61, %v524_v35  ;;  %v4410_v62 = vunpack.c.l.bf16 %v3919_v0  ;;  %v4426_v11 = vld [vmem:[#allocation32_spill] sm:$0xff] }
 0x198   :  { %v732_v14 = vadd.f32 %v731_v42, %v730_v44  ;;  %v649_v28 = vrot.slane %v648_v48, 2  ;;  %v4411_v33 = vunpack.c.l.bf16 %v3924_v55  ;;  %v4412_v53 = vunpack.c.l.bf16 %v3926_v19  ;;  %v4422_v42 = vld [vmem:[#allocation30_spill] sm:$0xff] }
 0x199   :  { %v773_v51 = vrot.slane %v772_v60, 4  ;;  %v691_v4 = vrot.slane %v690_v5, 2  ;;  %v4413_v57 = vunpack.c.l.bf16 %v3932_v7  ;;  %v4414_v18 = vunpack.c.l.bf16 %v3934_v39 }
 0x19a   :  { %v814_v43 = vadd.f32 %v4411_v33, %v4410_v62  ;;  %v733_v59 = vrot.slane %v732_v14, 2  ;;  %v4415_v9 = vunpack.c.l.bf16 %v3940_v45  ;;  %v4417_v50 = vunpack.c.l.bf16 %v4416_v41 }
 0x19b   :  { %v856_v25 = vadd.f32 %v4413_v57, %v4412_v53  ;;  %v774_v6 = vadd.f32 %v773_v51, %v772_v60  ;;  %v4419_v17 = vunpack.c.l.bf16 %v4418_v10  ;;  %v650_v29 = vadd.f32 %v649_v28, %v648_v48  ;;  %v4430_v51 = vld [vmem:[#allocation35_spill] sm:$0xff] }
 0x19c   :  { %v898_v23 = vadd.f32 %v4415_v9, %v4414_v18  ;;  %v692_v55 = vadd.f32 %v691_v4, %v690_v5  ;;  %v815_v32 = vrot.slane %v814_v43, 4  ;;  %v734_v19 = vadd.f32 %v733_v59, %v732_v14  ;;  %v4428_v5 = vld [vmem:[#allocation33_spill] sm:$0xff] }
 0x19d   :  { %v940_v0 = vadd.f32 %v4419_v17, %v4417_v50  ;;  %v857_v26 = vrot.slane %v856_v25, 4  ;;  %v775_v16 = vrot.slane %v774_v6, 2  ;;  %v651_v27 = vrot.slane %v650_v29, 1 }
 0x19e   :  { %v899_v7 = vrot.slane %v898_v23, 4  ;;  %v693_v35 = vrot.slane %v692_v55, 1  ;;  %v816_v56 = vadd.f32 %v815_v32, %v814_v43  ;;  %v568_v30 = vadd.f32 %v567_v3, %v566_v15 }
 0x19f   :  { %v941_v63 = vrot.slane %v940_v0, 4  ;;  %v858_v39 = vadd.f32 %v857_v26, %v856_v25  ;;  %v735_v45 = vrot.slane %v734_v19, 1  ;;  %v610_v8 = vadd.f32 %v609_v31, %v608_v36 }
 0x1a0   :  { %v900_v13 = vadd.f32 %v899_v7, %v898_v23  ;;  %v776_v58 = vadd.f32 %v775_v16, %v774_v6  ;;  %v817_v52 = vrot.slane %v816_v56, 2  ;;  %v652_v47 = vadd.f32 %v651_v27, %v650_v29 }
 0x1a1   :  { %v942_v46 = vadd.f32 %v941_v63, %v940_v0  ;;  %v859_v2 = vrot.slane %v858_v39, 2  ;;  %v694_v54 = vadd.f32 %v693_v35, %v692_v55  ;;  %v4421_v21 = vunpack.c.l.bf16 %v4420_v22 }
 0x1a2   :  { %v901_v38 = vrot.slane %v900_v13, 2  ;;  %v818_v34 = vadd.f32 %v817_v52, %v816_v56  ;;  %v4423_v40 = vunpack.c.l.bf16 %v4422_v42  ;;  %v4425_v15 = vunpack.c.l.bf16 %v4424_v24 }
 0x1a3   :  { %v943_v44 = vrot.slane %v942_v46, 2  ;;  %v860_v61 = vadd.f32 %v859_v2, %v858_v39  ;;  %v4427_v60 = vunpack.c.l.bf16 %v4426_v11  ;;  %v736_v36 = vadd.f32 %v735_v45, %v734_v19  ;;  %v2840_v11 = vld [vmem:[#allocation11 + $0x28] sm:$0xff]  }
 0x1a4   :  { %v982_v37 = vadd.f32 %v4423_v40, %v4421_v21  ;;  %v902_v31 = vadd.f32 %v901_v38, %v900_v13  ;;  %v4429_v14 = vunpack.c.l.bf16 %v4428_v5  ;;  %v4431_v28 = vunpack.c.l.bf16 %v4430_v51 }
 0x1a5   :  { %v1024_v3 = vadd.f32 %v4427_v60, %v4425_v15  ;;  %v944_v48 = vadd.f32 %v943_v44, %v942_v46  ;;  %v819_v62 = vrot.slane %v818_v34, 1  ;;  %v861_v33 = vrot.slane %v860_v61, 1  ;;  %v2839_v15 = vld [vmem:[#allocation11 + $0x68] sm:$0xff]   ;;  %v2841_v60 = vld [vmem:[#allocation11 + $0x70] sm:$0xff]  }
 0x1a6   :  { %v1066_v4 = vadd.f32 %v4431_v28, %v4429_v14  ;;  %v983_v43 = vrot.slane %v982_v37, 4  ;;  %v903_v57 = vrot.slane %v902_v31, 1  ;;  %v1108_v6 = vadd.f32 %v448_v49, %v442_v1  ;;  %2624 = vmatprep.subr.bf16.mxu1 %v2839_v15 }
 0x1a7   :  { %v1025_v53 = vrot.slane %v1024_v3, 4  ;;  %v945_v25 = vrot.slane %v944_v48, 1  ;;  %v820_v18 = vadd.f32 %v819_v62, %v818_v34  ;;  %v862_v9 = vadd.f32 %v861_v33, %v860_v61  ;;  %2625 = vmatpush3.bf16.msra.mxu1 %v2840_v11 }
 0x1a8   :  { %v1067_v59 = vrot.slane %v1066_v4, 4  ;;  %v984_v23 = vadd.f32 %v983_v43, %v982_v37  ;;  %v777_v50 = vrot.slane %v776_v58, 1  ;;  %v904_v10 = vadd.f32 %v903_v57, %v902_v31  ;;  %2626 = vmatprep.subr.bf16.mxu1 %v2841_v60  ;;  %v2844_v31 = vld [vmem:[#allocation11 + $0x38] sm:$0xff]  }
 0x1a9   :  { %v1026_v41 = vadd.f32 %v1025_v53, %v1024_v3  ;;  %v1109_v0 = vrot.slane %v1108_v6, 4  ;;  %v1253_v32 = vsel %vm1218_vm0, %v526_v20, %v4124_v12  ;;  %v1295_v26 = vsel %vm1218_vm0, %v862_v9, %v820_v18  ;;  %v2842_v3 = vld [vmem:[#allocation11 + $0x30] sm:$0xff]   ;;  %v1474_v43 = vld [vmem:[#allocation9] sm:$0x3] }
 0x1aa   :  { %v1068_v17 = vadd.f32 %v1067_v59, %v1066_v4  ;;  %v985_v29 = vrot.slane %v984_v23, 2  ;;  %v946_v19 = vadd.f32 %v945_v25, %v944_v48  ;;  %v1254_v1 = vsel %vm1220_vm1, %v568_v30, %v1253_v32  ;;  %v2845_v48 = vld [vmem:[#allocation14 + $0x40] sm:$0xff]  }
 0x1ab   :  { %v1027_v55 = vrot.slane %v1026_v41, 2  ;;  %v1110_v7 = vadd.f32 %v1109_v0, %v1108_v6  ;;  %v1255_v27 = vsel %vm1222_vm2, %v610_v8, %v1254_v1  ;;  %v1296_v35 = vsel %vm1220_vm1, %v904_v10, %v1295_v26  ;;  %2627 = vmatpush3.bf16.msra.mxu1 %v2842_v3  ;;  %v2849_v1 = vld [vmem:[#allocation14 + $0x50] sm:$0xff]  }
 0x1ac   :  { %v1069_v16 = vrot.slane %v1068_v17, 2  ;;  %v986_v49 = vadd.f32 %v985_v29, %v984_v23  ;;  %v778_v56 = vadd.f32 %v777_v50, %v776_v58  ;;  %v1256_v13 = vsel %vm1224_vm3, %v652_v47, %v1255_v27  ;;  %v2852_v27 = vld [vmem:[#allocation14 + $0x18] sm:$0xff]  }
 0x1ad   :  { %v1028_v63 = vadd.f32 %v1027_v55, %v1026_v41  ;;  %v1111_v45 = vrot.slane %v1110_v7, 2  ;;  %v1257_v20 = vsel %vm1226_vm4, %v694_v54, %v1256_v13  ;;  %v1297_v30 = vsel %vm1222_vm2, %v946_v19, %v1296_v35  ;;  %v2846_v19 = vld [vmem:[#allocation14] sm:$0xff]   ;;  %v2857_v13 = vld [vmem:[#allocation14 + $0x70] sm:$0xff]  }
 0x1ae   :  { %v1070_v39 = vadd.f32 %v1069_v16, %v1068_v17  ;;  %v987_v46 = vrot.slane %v986_v49, 1  ;;  %v1258_v38 = vsel %vm1228_vm5, %v736_v36, %v1257_v20  ;;  %v2843_v36 = vld [vmem:[#allocation11 + $0x78] sm:$0xff]   ;;  %v1476_v4 = vlaneseq  ;;  %v2847_v16 = vld [vmem:[#allocation14 + $0x48] sm:$0xff]   ;;  %v2853_v35 = vld [vmem:[#allocation14 + $0x60] sm:$0xff]  }
 0x1af   :  { %v1029_v12 = vrot.slane %v1028_v63, 1  ;;  %v1112_v2 = vadd.f32 %v1111_v45, %v1110_v7  ;;  %v1259_v58 = vsel %vm1230_vm6, %v778_v56, %v1258_v38  ;;  %2628 = vmatprep.subr.bf16.mxu1 %v2843_v36  ;;  %v2848_v7 = vld [vmem:[#allocation14 + $0x8] sm:$0xff]   ;;  %v2854_v56 = vld [vmem:[#allocation14 + $0x20] sm:$0xff]   ;;  %v2860_v20 = vld [vmem:[#allocation14 + $0x38] sm:$0xff]  }
 0x1b0   :  { %v1071_v52 = vrot.slane %v1070_v39, 1  ;;  %v988_v44 = vadd.f32 %v987_v46, %v986_v49  ;;  %v1364_v54 = vmul.f32 0.0625, %v1259_v58  ;;  %2629 = vmatpush3.bf16.msra.mxu1 %v2844_v31  ;;  %v1477_v62 = vshrl.u32 %v1476_v4, 7  ;;  %v2850_v49 = vld [vmem:[#allocation14 + $0x10] sm:$0xff]   ;;  %v2856_v45 = vld [vmem:[#allocation14 + $0x28] sm:$0xff]  }
 0x1b1   :  { %v1030_v34 = vadd.f32 %v1029_v12, %v1028_v63  ;;  %v1113_v61 = vrot.slane %v1112_v2, 1  ;;  %2636 = vmatprep.subr.bf16.mxu1 %v2845_v48  ;;  %v2851_v63 = vld [vmem:[#allocation14 + $0x58] sm:$0xff]   ;;  %v2858_v46 = vld [vmem:[#allocation14 + $0x30] sm:$0xff]  }
 0x1b2   :  { %v1072_v8 = vadd.f32 %v1071_v52, %v1070_v39  ;;  %v1298_v22 = vsel %vm1224_vm3, %v988_v44, %v1297_v30  ;;  %v1478_v33 = vsub.s32 0, %v1477_v62  ;;  %v1482_v53 = vsub.s32 1, %v1477_v62  ;;  %v2855_v39 = vld [vmem:[#allocation14 + $0x68] sm:$0xff]   ;;  %v2859_v12 = vld [vmem:[#allocation14 + $0x78] sm:$0xff]  }
 0x1b3   :  { %v1114_v21 = vadd.f32 %v1113_v61, %v1112_v2  ;;  %v1299_v47 = vsel %vm1226_vm4, %v1030_v34, %v1298_v22  ;;  %v2861_v52 = vld [vmem:[#allocation6] sm:$0xff]   ;;  %v2579_v38 = vld [vmem:[#allocation12] ss:$0 sm:$0xff] }
 0x1b4   :  { %v1300_v42 = vsel %vm1228_vm5, %v1072_v8, %v1299_v47  ;;  %v1479_v57 = vrot.slane %v1474_v43, %v1478_v33  ;;  %v1483_v25 = vrot.slane %v1474_v43, %v1482_v53 }
 0x1b5   :  { %v1301_v40 = vsel %vm1230_vm6, %v1114_v21, %v1300_v42 }
 0x1b6   :  { %v1370_v37 = vmul.f32 0.0625, %v1301_v40  ;;  %v2597_v40 = vld [vmem:[#allocation15] ss:$0 sm:$0xff] }
 0x1b8   :  { %v1376_v24 = vpack.c.bf16 %v1370_v37, %v1364_v54 }
 0x1ba   :  { %2085 = vmatmul.mubr.bf16.vlgmr.msra.gmra.mrb[0].mxu0 %v1376_v24 }
 0x235   :  { %v2000_v5 = vpop.f32.mrb[0].mxu1 }
 0x236   :  { %v2002_v14 = vpop.f32.mrb[1].mxu1  ;;  %v2001_v59 = vadd.f32 %v2000_v5, %v1479_v57 }
 0x237   :  { %v2004_v51 = vpop.f32.mrb[2].mxu1  ;;  %v2003_v6 = vadd.f32 %v2002_v14, %v1483_v25 }
 0x238   :  { %v2006_v28 = vpop.f32.mrb[3].mxu1  ;;  %v2005_v9 = vadd.f32 %v2004_v51, %v1479_v57 }
 0x239   :  { %v2007_v50 = vadd.f32 %v2006_v28, %v1483_v25 }
 0x28d   :  { %v2086_v18 = vpop.f32.mrb[0].mxu0 }
 0x28e   :  { %v2659_v23 = vadd.f32 %v2086_v18, %v2001_v59  ;;  %v2088_v41 = vpop.f32.mrb[1].mxu0 }
 0x28f   :  { %v2661_v10 = vadd.f32 %v2088_v41, %v2003_v6  ;;  %v2090_v17 = vpop.f32.mrb[2].mxu0 }
 0x290   :  { %v2663_v0 = vadd.f32 %v2090_v17, %v2005_v9  ;;  %v2092_v29 = vpop.f32.mrb[3].mxu0 }
 0x291   :  { %v2665_v55 = vadd.f32 %v2092_v29, %v2007_v50 }
 0x292   :  { %v2095_v32 = vpack.c.bf16 %v2663_v0, %v2659_v23 }
 0x293   :  { %v2096_v26 = vpack.c.bf16 %v2665_v55, %v2661_v10 }
 0x295   :  { %2264 = vmatprep.mubr.bf16.mxu1 %v2096_v26 }
 0x296   :  { %2265 = vmatmul.mubr.bf16.vlgmr.msra.gmra.mrb[4].mxu1 %v2095_v32 }
 0x297   :  { %2637 = vmatpush3.bf16.msra.mxu1 %v2846_v19  ;;  %2451 = vmatprep.mubr.bf16.mxu1 %v2861_v52 }
 0x298   :  { %2638 = vmatprep.subr.bf16.mxu1 %v2847_v16 }
 0x29b   :  { %2639 = vmatpush3.bf16.msra.mxu1 %v2848_v7 }
 0x29c   :  { %2640 = vmatprep.subr.bf16.mxu1 %v2849_v1 }
 0x29f   :  { %2641 = vmatpush3.bf16.msra.mxu1 %v2850_v49 }
 0x2a0   :  { %2642 = vmatprep.subr.bf16.mxu1 %v2851_v63 }
 0x2a3   :  { %2643 = vmatpush3.bf16.msra.mxu1 %v2852_v27 }
 0x2a4   :  { %2644 = vmatprep.subr.bf16.mxu1 %v2853_v35 }
 0x2a7   :  { %2645 = vmatpush3.bf16.msra.mxu1 %v2854_v56 }
 0x2a8   :  { %2646 = vmatprep.subr.bf16.mxu1 %v2855_v39 }
 0x2ab   :  { %2647 = vmatpush3.bf16.msra.mxu1 %v2856_v45 }
 0x2ac   :  { %2648 = vmatprep.subr.bf16.mxu1 %v2857_v13 }
 0x2af   :  { %2649 = vmatpush3.bf16.msra.mxu1 %v2858_v46 }
 0x2b0   :  { %2650 = vmatprep.subr.bf16.mxu1 %v2859_v12 }
 0x2b3   :  { %2651 = vmatpush3.bf16.msra.mxu1 %v2860_v20 }
 0x369   :  { %v2630_v2 = vpop.f32.mrb[4].mxu1 }
 0x36a   :  { %v2631_v30 = vpop.f32.mrb[5].mxu1 }
 0x36b   :  { %v2632_v44 = vadd.f32 %v2631_v30, %v2630_v2  ;;  %v2633_v34 = vpop.f32.mrb[6].mxu1 }
 0x36c   :  { %v2634_v8 = vpop.f32.mrb[7].mxu1 }
 0x36d   :  { %v2267_v61 = vadd.f32 %v2632_v44, %v2579_v38  ;;  %v2635_v58 = vadd.f32 %v2634_v8, %v2633_v34 }
 0x36f   :  { %v2270_v22 = vadd.f32 %v2635_v58, %v2579_v38  ;;  %v2273_v21 = vmax.f32 %v2267_v61, 0.0 }
 0x371   :  { %v2274_v47 = vmax.f32 %v2270_v22, 0.0 }
 0x373   :  { %v2275_v42 = vpack.c.bf16 %v2274_v47, %v2273_v21 }
 0x375   :  { %2452 = vmatmul.mubr.bf16.vlgmr.msra.gmra.mrb[8].mxu1 %v2275_v42 }
 0x448   :  { %v2652_v54 = vpop.f32.mrb[8].mxu1 }
 0x449   :  { %v2653_v37 = vpop.f32.mrb[9].mxu1 }
 0x44a   :  { %v2654_v24 = vadd.f32 %v2653_v37, %v2652_v54  ;;  %v2655_v15 = vpop.f32.mrb[10].mxu1 }
 0x44b   :  { %v2656_v11 = vpop.f32.mrb[11].mxu1 }
 0x44c   :  { %v2454_v60 = vadd.f32 %v2654_v24, %v2597_v40  ;;  %v2657_v3 = vadd.f32 %v2656_v11, %v2655_v15 }
 0x44e   :  { %2460 = vst [vmem:[#allocation17] sm:$0xff] %v2454_v60  ;;  %v2457_v36 = vadd.f32 %v2657_v3, %v2597_v40 }
 0x450   :  { %2461 = vst [vmem:[#allocation17 + $0x8] sm:$0xff] %v2457_v36 }
 0x451   :  { %3049 = shalt.err (!%p3046_p12)
}
 0x452   :  { %s3050_s17 = scalar_lea.hbm %s4192_s8, 256 }
 0x453   :  { %p3051_p13 = scmp.ne.s32.totalorder %s4192_s8, %s3050_s17  ;;  %p3054_p0 = scmp.lt.u32.totalorder %s3050_s17, %s4192_s8 }
 0x455   :  { %p3056_p1 = pnand %p3054_p0, %p3051_p13 }
 0x457   :  { %3059 = shalt.err (!%p3056_p1)
}
 0x458   :  { %2473 = dma.vmem_to_hbm [thread:$0]  %s2468_s1, 256, %s4192_s8, [#allocation5], %s3081_s0, %s3081_s0, %s3082_s24  }
 0x459   :  { %3070 = dma.done.wait [#allocation5], 256  }
 0x45a   :  { %3071 = vsyncadd [#allocation5], 4294967040 }
 0x45b   :  { %2477 = vsyncpa [#allocation4], 1 }
 0x45c   :  { %2478 = vsyncpa [#allocation7], 1 }
 0x45d   :  { %2479 = vsyncpa [#allocation10], 1 }
 0x45e   :  { %2480 = vsyncpa [#allocation13], 1 }
 0x45f   :  { %2481 = vsyncpa [#allocation16], 1 }
 0x460   :  { %2482 = vsyncpa [#allocation5], 1 }

</bundles_post_ra>
